<compile_context>
chip_gen: v5e
topology: v5e:2x2
jax: 0.10.0
libtpu: 0.0.40
codegen_flags: <defaults>
</compile_context>

<pallas_src>
import functools

import jax
import jax.numpy as jnp
from jax.experimental import pallas as pl
from jax.experimental.pallas import tpu as pltpu


# --------------------------------------------------------------------------
# Kernel
# --------------------------------------------------------------------------
def gnn_router_kernel(a_ref, x_hbm, wc_ref, bc_ref, p_ref, ic_ref,
                      wm1_ref, bm1_ref, wm2_ref, bm2_ref,
                      out_ref, h_scr, z_acc, dma_sem,
                      *, depth, tile_n, a_resident):
    layer = pl.program_id(0)          # conv layer index   (outer, slow)
    tile = pl.program_id(1)           # node row-tile index (inner, fast)
    n_tiles = pl.num_programs(1)

    # One-time: DMA the padded bf16 node features from HBM straight into
    # ping-pong slot 0 (x never occupies a pipelined VMEM input block).
    @pl.when((layer == 0) & (tile == 0))
    def _init():
        cp = pltpu.make_async_copy(x_hbm, h_scr.at[0], dma_sem)
        cp.start()
        cp.wait()

    # Zero the pooled-feature accumulator at the start of the last conv layer.
    @pl.when((layer == depth - 1) & (tile == 0))
    def _zero_pool():
        z_acc[...] = jnp.zeros_like(z_acc)

    row = pl.multiple_of(tile * tile_n, tile_n)

    def a_rows():
        if a_resident:
            return a_ref[pl.ds(row, tile_n), :]      # slice of resident A_hat
        return a_ref[...]                            # streamed row tile

    def conv(src_slot):
        # Message passing for this row tile (bf16 MXU, f32 accumulation),
        # then the GCN linear:  (A_hat[rows] @ h) @ W_l + b_l.
        msg = jnp.dot(a_rows(), h_scr[src_slot],
                      preferred_element_type=jnp.float32)
        return jnp.dot(msg.astype(jnp.bfloat16), wc_ref[0],
                       preferred_element_type=jnp.float32) + bc_ref[0]

    def hidden_layer(src_slot, dst_slot):
        out = jnp.maximum(conv(src_slot), 0.0)       # ReLU (dropout = id, eval)
        h_scr[dst_slot, pl.ds(row, tile_n), :] = out.astype(jnp.bfloat16)

    # Static ping-pong slots (even layers read 0 -> write 1, odd layers the
    # reverse), so all scratch indices stay static.
    if depth > 1:
        @pl.when((layer < depth - 1) & (layer % 2 == 0))
        def _hidden_even():
            hidden_layer(0, 1)

        @pl.when((layer < depth - 1) & (layer % 2 == 1))
        def _hidden_odd():
            hidden_layer(1, 0)

    # Last conv layer (no ReLU): fuse mean pooling into the tile loop so the
    # epilogue never re-reads h.  P is an exact 0/1 bf16 membership matrix;
    # the 1/count normalization is applied in f32 at finalize.
    last_src = (depth - 1) % 2

    @pl.when(layer == depth - 1)
    def _last_layer():
        out = conv(last_src)
        z_acc[...] += jnp.dot(p_ref[...], out.astype(jnp.bfloat16),
                              preferred_element_type=jnp.float32)

    # After the last tile of the last layer: normalize pool + tiny MLP head.
    @pl.when((layer == depth - 1) & (tile == n_tiles - 1))
    def _finalize():
        z = z_acc[...] * ic_ref[...]                 # [Bp, F] * [Bp, 1]  (f32)
        t = jnp.maximum(
            jnp.dot(z, wm1_ref[...], preferred_element_type=jnp.float32)
            + bm1_ref[...], 0.0)
        logits = jnp.dot(t, wm2_ref[...],
                         preferred_element_type=jnp.float32) + bm2_ref[...]
        out_ref[...] = logits.astype(out_ref.dtype)


# --------------------------------------------------------------------------
# Wrapper
# --------------------------------------------------------------------------
def _round_up(v, m):
    return ((v + m - 1) // m) * m


def _pad_to(arr, shape):
    return jnp.pad(arr, [(0, t - s) for s, t in zip(arr.shape, shape)])


def _vmem_budget_bytes():
    """Generation-aware VMEM budget: ~75% of physical (96 MiB on 128-MiB
    v5e/v6e, 48 MiB on 64-MiB v7x); conservative fallback if the query fails."""
    try:
        info = pltpu.get_tpu_info()
        cap = int(getattr(info, "vmem_capacity_bytes", 0) or 0)
        if cap > 0:
            return (cap * 3) // 4
    except Exception:
        pass
    return 48 * 1024 * 1024


def gnn_router_forward(x, a_hat, batch_ids, num_graphs, params, *, tile_n=None):
    """x: [N, in_dim] f32, a_hat: [N, N] normalized adjacency (f32),
    batch_ids: [N] int32.  Returns logits [num_graphs, num_experts] (f32)."""
    conv_ws, conv_bs, wm1, bm1, wm2, bm2 = params
    depth = len(conv_ws)
    n, in_dim = x.shape
    hidden = conv_ws[0].shape[1]
    h2 = wm1.shape[1]
    n_exp = wm2.shape[1]

    budget = _vmem_budget_bytes()
    if tile_n is None:
        # 256-row tiles fill the 256x256 MXU (v6e) and halve per-step overhead;
        # stay at 128 when VMEM is tight (v7x 64-MiB parts / unknown).
        tile_n = 256 if budget >= 80 * 1024 * 1024 else 128
    assert tile_n % 128 == 0

    f_pad = _round_up(max(in_dim, hidden), 128)   # shared width: x & conv outs
    h2_pad = _round_up(h2, 128)
    e_pad = _round_up(n_exp, 128)
    n_pad = _round_up(max(n, tile_n), tile_n)
    b_pad = _round_up(max(num_graphs, 8), 8)
    n_tiles = n_pad // tile_n

    # ---- resident-vs-streamed A_hat decision against the VMEM budget ----
    common = (2 * n_pad * f_pad * 2                       # h ping-pong (bf16)
              + b_pad * f_pad * 4                         # pooled accumulator
              + 2 * b_pad * tile_n * 2                    # streamed 0/1 pool
              + 2 * (f_pad * f_pad * 2 + f_pad * 4)       # conv W/b (2 buf)
              + f_pad * h2_pad * 4 + h2_pad * e_pad * 4   # MLP head weights
              + (h2_pad + e_pad) * 4 + b_pad * 4          # biases + 1/count
              + b_pad * e_pad * 4)                        # output block
    headroom = 4 * 1024 * 1024
    a_resident = (n_pad * n_pad * 2 + common + headroom) <= budget
    stream_bufs = 3 if (3 * tile_n * n_pad * 2 + common + headroom) <= budget else 2

    # ---- wrapper-side layout plumbing (zero padding keeps the math exact) ----
    x_p = _pad_to(x, (n_pad, f_pad)).astype(jnp.bfloat16)
    a_p = _pad_to(a_hat, (n_pad, n_pad)).astype(jnp.bfloat16)
    wc = jnp.stack([_pad_to(w, (f_pad, f_pad)) for w in conv_ws]).astype(jnp.bfloat16)
    bc = jnp.stack([_pad_to(b.reshape(1, -1), (1, f_pad)) for b in conv_bs])  # f32
    # Exact 0/1 membership matrix (bf16); 1/count applied in f32 in-kernel.
    onehot = (jnp.arange(num_graphs)[:, None] == batch_ids[None, :])
    pool = _pad_to(onehot.astype(jnp.bfloat16), (b_pad, n_pad))
    counts = jnp.maximum(jnp.sum(onehot.astype(jnp.float32), axis=-1,
                                 keepdims=True), 1.0)
    inv_counts = _pad_to(1.0 / counts, (b_pad, 1))
    wm1_p = _pad_to(wm1, (f_pad, h2_pad))
    bm1_p = _pad_to(bm1.reshape(1, -1), (1, h2_pad))
    wm2_p = _pad_to(wm2, (h2_pad, e_pad))
    bm2_p = _pad_to(bm2.reshape(1, -1), (1, e_pad))

    if a_resident:
        # Loaded once, revisited by every grid step, single buffer.
        a_spec = pl.BlockSpec((n_pad, n_pad), lambda l, i: (0, 0),
                              pipeline_mode=pl.Buffered(1))
    else:
        # Streamed row tiles (re-fetched per layer); extra buffer hides the
        # refill at each layer boundary when VMEM allows.
        a_spec = pl.BlockSpec((tile_n, n_pad), lambda l, i: (i, 0),
                              pipeline_mode=pl.Buffered(stream_bufs))

    kernel = functools.partial(gnn_router_kernel, depth=depth, tile_n=tile_n,
                               a_resident=a_resident)

    out = pl.pallas_call(
        kernel,
        out_shape=jax.ShapeDtypeStruct((b_pad, e_pad), jnp.float32),
        grid_spec=pltpu.PrefetchScalarGridSpec(
            num_scalar_prefetch=0,
            grid=(depth, n_tiles),                                  # tiles innermost
            in_specs=[
                a_spec,                                             # A_hat
                pl.BlockSpec(memory_space=pl.ANY),                  # x (HBM, one DMA)
                pl.BlockSpec((1, f_pad, f_pad), lambda l, i: (l, 0, 0)),  # conv W_l
                pl.BlockSpec((1, 1, f_pad), lambda l, i: (l, 0, 0)),      # conv b_l
                pl.BlockSpec((b_pad, tile_n), lambda l, i: (0, i)),       # 0/1 pool tile
                pl.BlockSpec((b_pad, 1), lambda l, i: (0, 0),
                             pipeline_mode=pl.Buffered(1)),               # 1/count
                pl.BlockSpec((f_pad, h2_pad), lambda l, i: (0, 0),
                             pipeline_mode=pl.Buffered(1)),               # MLP W1
                pl.BlockSpec((1, h2_pad), lambda l, i: (0, 0),
                             pipeline_mode=pl.Buffered(1)),               # MLP b1
                pl.BlockSpec((h2_pad, e_pad), lambda l, i: (0, 0),
                             pipeline_mode=pl.Buffered(1)),               # MLP W2
                pl.BlockSpec((1, e_pad), lambda l, i: (0, 0),
                             pipeline_mode=pl.Buffered(1)),               # MLP b2
            ],
            out_specs=pl.BlockSpec((b_pad, e_pad), lambda l, i: (0, 0)),
            scratch_shapes=[
                pltpu.VMEM((2, n_pad, f_pad), jnp.bfloat16),   # h ping-pong
                pltpu.VMEM((b_pad, f_pad), jnp.float32),       # pooled accumulator
                pltpu.SemaphoreType.DMA(()),                   # x-init DMA sem
            ]),
        compiler_params=pltpu.CompilerParams(
            # Both grid axes revisit the scratch / output -> keep "arbitrary".
            dimension_semantics=("arbitrary", "arbitrary"),
            vmem_limit_bytes=int(budget),
        ),
    )(a_p, x_p, wc, bc, pool, inv_counts, wm1_p, bm1_p, wm2_p, bm2_p)

    return out[:num_graphs, :n_exp]


# --------------------------------------------------------------------------
# Pure-JAX reference (mirrors the kernel's bf16 casts for a tight check)
# --------------------------------------------------------------------------
def reference_forward(x, a_hat, batch_ids, num_graphs, params):
    conv_ws, conv_bs, wm1, bm1, wm2, bm2 = params
    depth = len(conv_ws)
    a = a_hat.astype(jnp.bfloat16)
    h = x.astype(jnp.bfloat16)
    out = None
    for l in range(depth):
        msg = jnp.dot(a, h, preferred_element_type=jnp.float32)
        out = jnp.dot(msg.astype(jnp.bfloat16), conv_ws[l].astype(jnp.bfloat16),
                      preferred_element_type=jnp.float32) + conv_bs[l][None, :]
        if l < depth - 1:
            out = jnp.maximum(out, 0.0)
            h = out.astype(jnp.bfloat16)
    onehot = (jnp.arange(num_graphs)[:, None] == batch_ids[None, :])
    counts = jnp.maximum(jnp.sum(onehot.astype(jnp.float32), axis=-1,
                                 keepdims=True), 1.0)
    z = jnp.dot(onehot.astype(jnp.bfloat16), out.astype(jnp.bfloat16),
                preferred_element_type=jnp.float32) / counts
    t = jnp.maximum(jnp.dot(z, wm1) + bm1[None, :], 0.0)
    return jnp.dot(t, wm2) + bm2[None, :]


# --------------------------------------------------------------------------
# Graph preprocessing + init
# --------------------------------------------------------------------------
def build_gcn_adjacency(src, dst, n):
    """Dense A_hat = D^-1/2 (A + I) D^-1/2 (GCNConv normalization)."""
    a = jnp.zeros((n, n), jnp.float32).at[dst, src].set(1.0)   # message s -> d
    idx = jnp.arange(n)
    a = a.at[idx, idx].set(1.0)                                # self loops
    deg = jnp.sum(a, axis=1)
    dinv = jax.lax.rsqrt(jnp.maximum(deg, 1.0))
    return dinv[:, None] * a * dinv[None, :]


def init_params(key, input_dim, hidden_dim, depth, num_experts):
    """Weights stored [in, out] (transpose of torch nn.Linear .weight)."""
    def linear(k, fan_in, fan_out):
        kw, kb = jax.random.split(k)
        bound = float(fan_in) ** -0.5
        w = jax.random.uniform(kw, (fan_in, fan_out), jnp.float32, -bound, bound)
        b = jax.random.uniform(kb, (fan_out,), jnp.float32, -bound, bound)
        return w, b

    conv_ws, conv_bs = [], []
    dims = [input_dim] + [hidden_dim] * depth
    for i in range(depth):
        key, k = jax.random.split(key)
        w, b = linear(k, dims[i], dims[i + 1])
        conv_ws.append(w)
        conv_bs.append(b)
    key, k1 = jax.random.split(key)
    wm1, bm1 = linear(k1, hidden_dim, hidden_dim // 2)
    key, k2 = jax.random.split(key)
    wm2, bm2 = linear(k2, hidden_dim // 2, num_experts)
    return conv_ws, conv_bs, wm1, bm1, wm2, bm2


# --------------------------------------------------------------------------
# Demo
# --------------------------------------------------------------------------
if __name__ == "__main__":
    key = jax.random.PRNGKey(0)
    input_dim, hidden_dim, depth, num_experts = 32, 32, 2, 4
    graph_sizes = [80, 70, 50]                 # 3 graphs, 200 nodes total
    n_nodes = sum(graph_sizes)
    num_graphs = len(graph_sizes)

    # Node features.
    key, kx = jax.random.split(key)
    x = jax.random.normal(kx, (n_nodes, input_dim), jnp.float32)

    # PyG-style batch assignment (nodes sorted by graph).
    batch_ids = jnp.concatenate(
        [jnp.full((s,), g, jnp.int32) for g, s in enumerate(graph_sizes)])

    # Random intra-graph undirected edges -> dense normalized adjacency.
    srcs, dsts = [], []
    start = 0
    for s in graph_sizes:
        key, ks, kd = jax.random.split(key, 3)
        e = 2 * s
        es = jax.random.randint(ks, (e,), 0, s) + start
        ed = jax.random.randint(kd, (e,), 0, s) + start
        srcs += [es, ed]                      # symmetrize
        dsts += [ed, es]
        start += s
    a_hat = build_gcn_adjacency(jnp.concatenate(srcs), jnp.concatenate(dsts),
                                n_nodes)

    params = init_params(key, input_dim, hidden_dim, depth, num_experts)

    logits = gnn_router_forward(x, a_hat, batch_ids, num_graphs, params)
    jax.block_until_ready(logits)
    assert logits.shape == (num_graphs, num_experts)

    with jax.default_matmul_precision("highest"):
        ref = reference_forward(x, a_hat, batch_ids, num_graphs, params)
        ref = jax.block_until_ready(ref)

    assert bool(jnp.allclose(logits, ref, atol=5e-3, rtol=5e-3)), (logits, ref)
    print("KERNEL_OK")
</pallas_src>

<mosaic_0001>
module attributes {stable_mosaic.version = 11 : i64} {
  func.func @gnn_router_kernel(%arg0: i32, %arg1: i32, %arg2: memref<256x256xbf16, #tpu.memory_space<vmem>>, %arg3: memref<256x128xbf16, #tpu.memory_space<any>>, %arg4: memref<1x128x128xbf16, #tpu.memory_space<vmem>>, %arg5: memref<1x1x128xf32, #tpu.memory_space<vmem>>, %arg6: memref<8x128xbf16, #tpu.memory_space<vmem>>, %arg7: memref<8x1xf32, #tpu.memory_space<vmem>>, %arg8: memref<128x128xf32, #tpu.memory_space<vmem>>, %arg9: memref<1x128xf32, #tpu.memory_space<vmem>>, %arg10: memref<128x128xf32, #tpu.memory_space<vmem>>, %arg11: memref<1x128xf32, #tpu.memory_space<vmem>>, %arg12: memref<8x128xf32, #tpu.memory_space<vmem>>, %arg13: memref<2x256x128xbf16, #tpu.memory_space<vmem>>, %arg14: memref<8x128xf32, #tpu.memory_space<vmem>>, %arg15: memref<!tpu.dma_semaphore, #tpu.memory_space<semaphore_mem>>) attributes {dimension_semantics = [#tpu.dimension_semantics<arbitrary>, #tpu.dimension_semantics<arbitrary>], iteration_bounds = array<i64: 2, 2>, scalar_prefetch = 0 : i64, scratch_operands = 3 : i64, tpu.core_type = #tpu.core_type<tc>, window_params = [{pipeline_mode = #tpu.pipeline_mode<synchronous>, transform_indices = @transform_0, window_bounds = array<i64: 256, 256>}, {}, {transform_indices = @transform_2, window_bounds = array<i64: 1, 128, 128>}, {transform_indices = @transform_3, window_bounds = array<i64: 1, 1, 128>}, {transform_indices = @transform_4, window_bounds = array<i64: 8, 128>}, {pipeline_mode = #tpu.pipeline_mode<synchronous>, transform_indices = @transform_5, window_bounds = array<i64: 8, 1>}, {pipeline_mode = #tpu.pipeline_mode<synchronous>, transform_indices = @transform_6, window_bounds = array<i64: 128, 128>}, {pipeline_mode = #tpu.pipeline_mode<synchronous>, transform_indices = @transform_7, window_bounds = array<i64: 1, 128>}, {pipeline_mode = #tpu.pipeline_mode<synchronous>, transform_indices = @transform_8, window_bounds = array<i64: 128, 128>}, {pipeline_mode = #tpu.pipeline_mode<synchronous>, transform_indices = @transform_9, window_bounds = array<i64: 1, 128>}, {pipeline_mode = #tpu.pipeline_mode<synchronous>, transform_indices = @transform_10, window_bounds = array<i64: 8, 128>}]} {
    %c0_i32 = arith.constant 0 : i32
    %0 = arith.cmpi eq, %arg0, %c0_i32 : i32
    %c0_i32_0 = arith.constant 0 : i32
    %1 = arith.cmpi eq, %arg1, %c0_i32_0 : i32
    %2 = arith.andi %0, %1 : i1
    %3 = arith.extui %2 : i1 to i32
    %c0_i32_1 = arith.constant 0 : i32
    %4 = arith.cmpi ne, %3, %c0_i32_1 : i32
    scf.if %4 {
      %c0_i32_26 = arith.constant 0 : i32
      %c0_i32_27 = arith.constant 0 : i32
      %c0_i32_28 = arith.constant 0 : i32
      %50 = tpu.memref_slice %arg13[%c0_i32_26, %c0_i32_27, %c0_i32_28] : memref<2x256x128xbf16, #tpu.memory_space<vmem>> -> memref<1x256x128xbf16, #tpu.memory_space<vmem>>
      %51 = tpu.memref_squeeze %50 : memref<1x256x128xbf16, #tpu.memory_space<vmem>> -> memref<256x128xbf16, #tpu.memory_space<vmem>>
      tpu.enqueue_dma source(%arg3 : memref<256x128xbf16, #tpu.memory_space<any>>) target(%51 : memref<256x128xbf16, #tpu.memory_space<vmem>>) target_semaphore(%arg15 : memref<!tpu.dma_semaphore, #tpu.memory_space<semaphore_mem>>)
      %c0_i32_29 = arith.constant 0 : i32
      %c0_i32_30 = arith.constant 0 : i32
      %c0_i32_31 = arith.constant 0 : i32
      %52 = tpu.memref_slice %arg13[%c0_i32_29, %c0_i32_30, %c0_i32_31] : memref<2x256x128xbf16, #tpu.memory_space<vmem>> -> memref<1x256x128xbf16, #tpu.memory_space<vmem>>
      %53 = tpu.memref_squeeze %52 : memref<1x256x128xbf16, #tpu.memory_space<vmem>> -> memref<256x128xbf16, #tpu.memory_space<vmem>>
      tpu.wait_dma2 semaphore(%arg15 : memref<!tpu.dma_semaphore, #tpu.memory_space<semaphore_mem>>) src(%arg3 : memref<256x128xbf16, #tpu.memory_space<any>>) dst(%53 : memref<256x128xbf16, #tpu.memory_space<vmem>>)
    } else {
    }
    %c1_i32 = arith.constant 1 : i32
    %5 = arith.cmpi eq, %arg0, %c1_i32 : i32
    %c0_i32_2 = arith.constant 0 : i32
    %6 = arith.cmpi eq, %arg1, %c0_i32_2 : i32
    %7 = arith.andi %5, %6 : i1
    %8 = arith.extui %7 : i1 to i32
    %c0_i32_3 = arith.constant 0 : i32
    %9 = arith.cmpi ne, %8, %c0_i32_3 : i32
    scf.if %9 {
      %cst = arith.constant 0.000000e+00 : f32
      %50 = vector.broadcast %cst : f32 to vector<8x128xf32>
      %c0 = arith.constant 0 : index
      %c0_26 = arith.constant 0 : index
      %51 = vector.load %arg14[%c0, %c0_26] : memref<8x128xf32, #tpu.memory_space<vmem>>, vector<8x128xf32>
      tpu.vector_store %arg14[%c0, %c0_26], %50 {strides = array<i32>} : memref<8x128xf32, #tpu.memory_space<vmem>>, vector<8x128xf32>,
    } else {
    }
    %c128_i32 = arith.constant 128 : i32
    %10 = arith.muli %arg1, %c128_i32 : i32
    %11 = tpu.assume_multiple %10, 128 : i32
    %c1_i32_4 = arith.constant 1 : i32
    %12 = arith.cmpi slt, %arg0, %c1_i32_4 : i32
    %c2_i32 = arith.constant 2 : i32
    %c0_i32_5 = arith.constant 0 : i32
    %13 = arith.cmpi eq, %c2_i32, %c0_i32_5 : i32
    %c1_i32_6 = arith.constant 1 : i32
    %14 = arith.select %13, %c1_i32_6, %c2_i32 : i32
    %15 = arith.remsi %arg0, %14 : i32
    %c0_i32_7 = arith.constant 0 : i32
    %16 = arith.cmpi ne, %15, %c0_i32_7 : i32
    %c0_i32_8 = arith.constant 0 : i32
    %17 = arith.cmpi slt, %15, %c0_i32_8 : i32
    %c0_i32_9 = arith.constant 0 : i32
    %18 = arith.cmpi slt, %14, %c0_i32_9 : i32
    %19 = arith.xori %17, %18 : i1
    %20 = arith.andi %19, %16 : i1
    %21 = arith.addi %15, %14 : i32
    %22 = arith.select %20, %21, %15 : i32
    %c0_i32_10 = arith.constant 0 : i32
    %23 = arith.cmpi eq, %22, %c0_i32_10 : i32
    %24 = arith.andi %12, %23 : i1
    %25 = arith.extui %24 : i1 to i32
    %c0_i32_11 = arith.constant 0 : i32
    %26 = arith.cmpi ne, %25, %c0_i32_11 : i32
    scf.if %26 {
      %50 = arith.index_cast %11 : i32 to index
      %c0 = arith.constant 0 : index
      %51 = vector.load %arg2[%50, %c0] : memref<256x256xbf16, #tpu.memory_space<vmem>>, vector<128x256xbf16>
      %c0_26 = arith.constant 0 : index
      %c0_27 = arith.constant 0 : index
      %c0_28 = arith.constant 0 : index
      %52 = vector.load %arg13[%c0_26, %c0_27, %c0_28] : memref<2x256x128xbf16, #tpu.memory_space<vmem>>, vector<1x256x128xbf16>
      %53 = vector.shape_cast %52 : vector<1x256x128xbf16> to vector<256x128xbf16>
      %cst = arith.constant dense<0.000000e+00> : vector<128x128xf32>
      %54 = tpu.matmul %51, %53, %cst {dimension_numbers = #tpu.dot_dimension_numbers<[1], [0], [0], [1], [0, 0, 1, 1], [], []>} : vector<128x256xbf16>, vector<256x128xbf16>, vector<128x128xf32> -> vector<128x128xf32>
      %55 = arith.truncf %54 : vector<128x128xf32> to vector<128x128xbf16>
      %c0_29 = arith.constant 0 : index
      %c0_30 = arith.constant 0 : index
      %c0_31 = arith.constant 0 : index
      %56 = vector.load %arg4[%c0_29, %c0_30, %c0_31] : memref<1x128x128xbf16, #tpu.memory_space<vmem>>, vector<1x128x128xbf16>
      %57 = vector.shape_cast %56 : vector<1x128x128xbf16> to vector<128x128xbf16>
      %cst_32 = arith.constant dense<0.000000e+00> : vector<128x128xf32>
      %58 = tpu.matmul %55, %57, %cst_32 {dimension_numbers = #tpu.dot_dimension_numbers<[1], [0], [0], [1], [0, 0, 1, 1], [], []>} : vector<128x128xbf16>, vector<128x128xbf16>, vector<128x128xf32> -> vector<128x128xf32>
      %c0_33 = arith.constant 0 : index
      %c0_34 = arith.constant 0 : index
      %c0_35 = arith.constant 0 : index
      %59 = vector.load %arg5[%c0_33, %c0_34, %c0_35] : memref<1x1x128xf32, #tpu.memory_space<vmem>>, vector<1x1x128xf32>
      %60 = vector.shape_cast %59 : vector<1x1x128xf32> to vector<1x128xf32>
      %61 = vector.broadcast %60 : vector<1x128xf32> to vector<128x128xf32>
      %62 = arith.addf %58, %61 : vector<128x128xf32>
      %cst_36 = arith.constant 0.000000e+00 : f32
      %63 = vector.broadcast %cst_36 : f32 to vector<128x128xf32>
      %64 = arith.maximumf %62, %63 : vector<128x128xf32>
      %65 = arith.truncf %64 : vector<128x128xf32> to vector<128x128xbf16>
      %c1 = arith.constant 1 : index
      %66 = arith.index_cast %11 : i32 to index
      %c0_37 = arith.constant 0 : index
      %67 = vector.load %arg13[%c1, %66, %c0_37] : memref<2x256x128xbf16, #tpu.memory_space<vmem>>, vector<1x128x128xbf16>
      %68 = vector.shape_cast %67 : vector<1x128x128xbf16> to vector<128x128xbf16>
      %69 = vector.shape_cast %65 : vector<128x128xbf16> to vector<1x128x128xbf16>
      tpu.vector_store %arg13[%c1, %66, %c0_37], %69 {strides = array<i32>} : memref<2x256x128xbf16, #tpu.memory_space<vmem>>, vector<1x128x128xbf16>,
    } else {
    }
    %c1_i32_12 = arith.constant 1 : i32
    %27 = arith.cmpi slt, %arg0, %c1_i32_12 : i32
    %c2_i32_13 = arith.constant 2 : i32
    %c0_i32_14 = arith.constant 0 : i32
    %28 = arith.cmpi eq, %c2_i32_13, %c0_i32_14 : i32
    %c1_i32_15 = arith.constant 1 : i32
    %29 = arith.select %28, %c1_i32_15, %c2_i32_13 : i32
    %30 = arith.remsi %arg0, %29 : i32
    %c0_i32_16 = arith.constant 0 : i32
    %31 = arith.cmpi ne, %30, %c0_i32_16 : i32
    %c0_i32_17 = arith.constant 0 : i32
    %32 = arith.cmpi slt, %30, %c0_i32_17 : i32
    %c0_i32_18 = arith.constant 0 : i32
    %33 = arith.cmpi slt, %29, %c0_i32_18 : i32
    %34 = arith.xori %32, %33 : i1
    %35 = arith.andi %34, %31 : i1
    %36 = arith.addi %30, %29 : i32
    %37 = arith.select %35, %36, %30 : i32
    %c1_i32_19 = arith.constant 1 : i32
    %38 = arith.cmpi eq, %37, %c1_i32_19 : i32
    %39 = arith.andi %27, %38 : i1
    %40 = arith.extui %39 : i1 to i32
    %c0_i32_20 = arith.constant 0 : i32
    %41 = arith.cmpi ne, %40, %c0_i32_20 : i32
    scf.if %41 {
      %50 = arith.index_cast %11 : i32 to index
      %c0 = arith.constant 0 : index
      %51 = vector.load %arg2[%50, %c0] : memref<256x256xbf16, #tpu.memory_space<vmem>>, vector<128x256xbf16>
      %c1 = arith.constant 1 : index
      %c0_26 = arith.constant 0 : index
      %c0_27 = arith.constant 0 : index
      %52 = vector.load %arg13[%c1, %c0_26, %c0_27] : memref<2x256x128xbf16, #tpu.memory_space<vmem>>, vector<1x256x128xbf16>
      %53 = vector.shape_cast %52 : vector<1x256x128xbf16> to vector<256x128xbf16>
      %cst = arith.constant dense<0.000000e+00> : vector<128x128xf32>
      %54 = tpu.matmul %51, %53, %cst {dimension_numbers = #tpu.dot_dimension_numbers<[1], [0], [0], [1], [0, 0, 1, 1], [], []>} : vector<128x256xbf16>, vector<256x128xbf16>, vector<128x128xf32> -> vector<128x128xf32>
      %55 = arith.truncf %54 : vector<128x128xf32> to vector<128x128xbf16>
      %c0_28 = arith.constant 0 : index
      %c0_29 = arith.constant 0 : index
      %c0_30 = arith.constant 0 : index
      %56 = vector.load %arg4[%c0_28, %c0_29, %c0_30] : memref<1x128x128xbf16, #tpu.memory_space<vmem>>, vector<1x128x128xbf16>
      %57 = vector.shape_cast %56 : vector<1x128x128xbf16> to vector<128x128xbf16>
      %cst_31 = arith.constant dense<0.000000e+00> : vector<128x128xf32>
      %58 = tpu.matmul %55, %57, %cst_31 {dimension_numbers = #tpu.dot_dimension_numbers<[1], [0], [0], [1], [0, 0, 1, 1], [], []>} : vector<128x128xbf16>, vector<128x128xbf16>, vector<128x128xf32> -> vector<128x128xf32>
      %c0_32 = arith.constant 0 : index
      %c0_33 = arith.constant 0 : index
      %c0_34 = arith.constant 0 : index
      %59 = vector.load %arg5[%c0_32, %c0_33, %c0_34] : memref<1x1x128xf32, #tpu.memory_space<vmem>>, vector<1x1x128xf32>
      %60 = vector.shape_cast %59 : vector<1x1x128xf32> to vector<1x128xf32>
      %61 = vector.broadcast %60 : vector<1x128xf32> to vector<128x128xf32>
      %62 = arith.addf %58, %61 : vector<128x128xf32>
      %cst_35 = arith.constant 0.000000e+00 : f32
      %63 = vector.broadcast %cst_35 : f32 to vector<128x128xf32>
      %64 = arith.maximumf %62, %63 : vector<128x128xf32>
      %65 = arith.truncf %64 : vector<128x128xf32> to vector<128x128xbf16>
      %c0_36 = arith.constant 0 : index
      %66 = arith.index_cast %11 : i32 to index
      %c0_37 = arith.constant 0 : index
      %67 = vector.load %arg13[%c0_36, %66, %c0_37] : memref<2x256x128xbf16, #tpu.memory_space<vmem>>, vector<1x128x128xbf16>
      %68 = vector.shape_cast %67 : vector<1x128x128xbf16> to vector<128x128xbf16>
      %69 = vector.shape_cast %65 : vector<128x128xbf16> to vector<1x128x128xbf16>
      tpu.vector_store %arg13[%c0_36, %66, %c0_37], %69 {strides = array<i32>} : memref<2x256x128xbf16, #tpu.memory_space<vmem>>, vector<1x128x128xbf16>,
    } else {
    }
    %c1_i32_21 = arith.constant 1 : i32
    %42 = arith.cmpi eq, %arg0, %c1_i32_21 : i32
    %43 = arith.extui %42 : i1 to i32
    %c0_i32_22 = arith.constant 0 : i32
    %44 = arith.cmpi ne, %43, %c0_i32_22 : i32
    scf.if %44 {
      %50 = arith.index_cast %11 : i32 to index
      %c0 = arith.constant 0 : index
      %51 = vector.load %arg2[%50, %c0] : memref<256x256xbf16, #tpu.memory_space<vmem>>, vector<128x256xbf16>
      %c1 = arith.constant 1 : index
      %c0_26 = arith.constant 0 : index
      %c0_27 = arith.constant 0 : index
      %52 = vector.load %arg13[%c1, %c0_26, %c0_27] : memref<2x256x128xbf16, #tpu.memory_space<vmem>>, vector<1x256x128xbf16>
      %53 = vector.shape_cast %52 : vector<1x256x128xbf16> to vector<256x128xbf16>
      %cst = arith.constant dense<0.000000e+00> : vector<128x128xf32>
      %54 = tpu.matmul %51, %53, %cst {dimension_numbers = #tpu.dot_dimension_numbers<[1], [0], [0], [1], [0, 0, 1, 1], [], []>} : vector<128x256xbf16>, vector<256x128xbf16>, vector<128x128xf32> -> vector<128x128xf32>
      %55 = arith.truncf %54 : vector<128x128xf32> to vector<128x128xbf16>
      %c0_28 = arith.constant 0 : index
      %c0_29 = arith.constant 0 : index
      %c0_30 = arith.constant 0 : index
      %56 = vector.load %arg4[%c0_28, %c0_29, %c0_30] : memref<1x128x128xbf16, #tpu.memory_space<vmem>>, vector<1x128x128xbf16>
      %57 = vector.shape_cast %56 : vector<1x128x128xbf16> to vector<128x128xbf16>
      %cst_31 = arith.constant dense<0.000000e+00> : vector<128x128xf32>
      %58 = tpu.matmul %55, %57, %cst_31 {dimension_numbers = #tpu.dot_dimension_numbers<[1], [0], [0], [1], [0, 0, 1, 1], [], []>} : vector<128x128xbf16>, vector<128x128xbf16>, vector<128x128xf32> -> vector<128x128xf32>
      %c0_32 = arith.constant 0 : index
      %c0_33 = arith.constant 0 : index
      %c0_34 = arith.constant 0 : index
      %59 = vector.load %arg5[%c0_32, %c0_33, %c0_34] : memref<1x1x128xf32, #tpu.memory_space<vmem>>, vector<1x1x128xf32>
      %60 = vector.shape_cast %59 : vector<1x1x128xf32> to vector<1x128xf32>
      %61 = vector.broadcast %60 : vector<1x128xf32> to vector<128x128xf32>
      %62 = arith.addf %58, %61 : vector<128x128xf32>
      %c0_35 = arith.constant 0 : index
      %c0_36 = arith.constant 0 : index
      %63 = vector.load %arg14[%c0_35, %c0_36] : memref<8x128xf32, #tpu.memory_space<vmem>>, vector<8x128xf32>
      %c0_37 = arith.constant 0 : index
      %c0_38 = arith.constant 0 : index
      %64 = vector.load %arg6[%c0_37, %c0_38] : memref<8x128xbf16, #tpu.memory_space<vmem>>, vector<8x128xbf16>
      %65 = arith.truncf %62 : vector<128x128xf32> to vector<128x128xbf16>
      %cst_39 = arith.constant dense<0.000000e+00> : vector<8x128xf32>
      %66 = tpu.matmul %64, %65, %cst_39 {dimension_numbers = #tpu.dot_dimension_numbers<[1], [0], [0], [1], [0, 0, 1, 1], [], []>} : vector<8x128xbf16>, vector<128x128xbf16>, vector<8x128xf32> -> vector<8x128xf32>
      %67 = arith.addf %63, %66 : vector<8x128xf32>
      %c0_40 = arith.constant 0 : index
      %c0_41 = arith.constant 0 : index
      %68 = vector.load %arg14[%c0_40, %c0_41] : memref<8x128xf32, #tpu.memory_space<vmem>>, vector<8x128xf32>
      tpu.vector_store %arg14[%c0_40, %c0_41], %67 {strides = array<i32>} : memref<8x128xf32, #tpu.memory_space<vmem>>, vector<8x128xf32>,
    } else {
    }
    %c1_i32_23 = arith.constant 1 : i32
    %45 = arith.cmpi eq, %arg0, %c1_i32_23 : i32
    %c1_i32_24 = arith.constant 1 : i32
    %46 = arith.cmpi eq, %arg1, %c1_i32_24 : i32
    %47 = arith.andi %45, %46 : i1
    %48 = arith.extui %47 : i1 to i32
    %c0_i32_25 = arith.constant 0 : i32
    %49 = arith.cmpi ne, %48, %c0_i32_25 : i32
    scf.if %49 {
      %c0 = arith.constant 0 : index
      %c0_26 = arith.constant 0 : index
      %50 = vector.load %arg14[%c0, %c0_26] : memref<8x128xf32, #tpu.memory_space<vmem>>, vector<8x128xf32>
      %c0_27 = arith.constant 0 : index
      %c0_28 = arith.constant 0 : index
      %51 = vector.load %arg7[%c0_27, %c0_28] : memref<8x1xf32, #tpu.memory_space<vmem>>, vector<8x1xf32>
      %52 = vector.broadcast %51 : vector<8x1xf32> to vector<8x128xf32>
      %53 = arith.mulf %50, %52 : vector<8x128xf32>
      %c0_29 = arith.constant 0 : index
      %c0_30 = arith.constant 0 : index
      %54 = vector.load %arg8[%c0_29, %c0_30] : memref<128x128xf32, #tpu.memory_space<vmem>>, vector<128x128xf32>
      %cst = arith.constant dense<0.000000e+00> : vector<8x128xf32>
      %55 = tpu.matmul %53, %54, %cst {dimension_numbers = #tpu.dot_dimension_numbers<[1], [0], [0], [1], [0, 0, 1, 1], [], []>} : vector<8x128xf32>, vector<128x128xf32>, vector<8x128xf32> -> vector<8x128xf32>
      %c0_31 = arith.constant 0 : index
      %c0_32 = arith.constant 0 : index
      %56 = vector.load %arg9[%c0_31, %c0_32] : memref<1x128xf32, #tpu.memory_space<vmem>>, vector<1x128xf32>
      %57 = vector.broadcast %56 : vector<1x128xf32> to vector<8x128xf32>
      %58 = arith.addf %55, %57 : vector<8x128xf32>
      %cst_33 = arith.constant 0.000000e+00 : f32
      %59 = vector.broadcast %cst_33 : f32 to vector<8x128xf32>
      %60 = arith.maximumf %58, %59 : vector<8x128xf32>
      %c0_34 = arith.constant 0 : index
      %c0_35 = arith.constant 0 : index
      %61 = vector.load %arg10[%c0_34, %c0_35] : memref<128x128xf32, #tpu.memory_space<vmem>>, vector<128x128xf32>
      %cst_36 = arith.constant dense<0.000000e+00> : vector<8x128xf32>
      %62 = tpu.matmul %60, %61, %cst_36 {dimension_numbers = #tpu.dot_dimension_numbers<[1], [0], [0], [1], [0, 0, 1, 1], [], []>} : vector<8x128xf32>, vector<128x128xf32>, vector<8x128xf32> -> vector<8x128xf32>
      %c0_37 = arith.constant 0 : index
      %c0_38 = arith.constant 0 : index
      %63 = vector.load %arg11[%c0_37, %c0_38] : memref<1x128xf32, #tpu.memory_space<vmem>>, vector<1x128xf32>
      %64 = vector.broadcast %63 : vector<1x128xf32> to vector<8x128xf32>
      %65 = arith.addf %62, %64 : vector<8x128xf32>
      %c0_39 = arith.constant 0 : index
      %c0_40 = arith.constant 0 : index
      %66 = vector.load %arg12[%c0_39, %c0_40] : memref<8x128xf32, #tpu.memory_space<vmem>>, vector<8x128xf32>
      tpu.vector_store %arg12[%c0_39, %c0_40], %65 {strides = array<i32>} : memref<8x128xf32, #tpu.memory_space<vmem>>, vector<8x128xf32>,
    } else {
    }
    return
  }
  func.func @transform_0(%arg0: i32, %arg1: i32) -> (i32, i32) {
    %c0_i32 = arith.constant 0 : i32
    %c0_i32_0 = arith.constant 0 : i32
    %c0_i32_1 = arith.constant 0 : i32
    return %c0_i32, %c0_i32_0 : i32, i32
  }
  func.func @transform_2(%arg0: i32, %arg1: i32) -> (i32, i32, i32) {
    %c0_i32 = arith.constant 0 : i32
    %c0_i32_0 = arith.constant 0 : i32
    %c0_i32_1 = arith.constant 0 : i32
    return %arg0, %c0_i32, %c0_i32_0 : i32, i32, i32
  }
  func.func @transform_3(%arg0: i32, %arg1: i32) -> (i32, i32, i32) {
    %c0_i32 = arith.constant 0 : i32
    %c0_i32_0 = arith.constant 0 : i32
    %c0_i32_1 = arith.constant 0 : i32
    return %arg0, %c0_i32, %c0_i32_0 : i32, i32, i32
  }
  func.func @transform_4(%arg0: i32, %arg1: i32) -> (i32, i32) {
    %c0_i32 = arith.constant 0 : i32
    %c0_i32_0 = arith.constant 0 : i32
    return %c0_i32, %arg1 : i32, i32
  }
  func.func @transform_5(%arg0: i32, %arg1: i32) -> (i32, i32) {
    %c0_i32 = arith.constant 0 : i32
    %c0_i32_0 = arith.constant 0 : i32
    %c0_i32_1 = arith.constant 0 : i32
    return %c0_i32, %c0_i32_0 : i32, i32
  }
  func.func @transform_6(%arg0: i32, %arg1: i32) -> (i32, i32) {
    %c0_i32 = arith.constant 0 : i32
    %c0_i32_0 = arith.constant 0 : i32
    %c0_i32_1 = arith.constant 0 : i32
    return %c0_i32, %c0_i32_0 : i32, i32
  }
  func.func @transform_7(%arg0: i32, %arg1: i32) -> (i32, i32) {
    %c0_i32 = arith.constant 0 : i32
    %c0_i32_0 = arith.constant 0 : i32
    %c0_i32_1 = arith.constant 0 : i32
    return %c0_i32, %c0_i32_0 : i32, i32
  }
  func.func @transform_8(%arg0: i32, %arg1: i32) -> (i32, i32) {
    %c0_i32 = arith.constant 0 : i32
    %c0_i32_0 = arith.constant 0 : i32
    %c0_i32_1 = arith.constant 0 : i32
    return %c0_i32, %c0_i32_0 : i32, i32
  }
  func.func @transform_9(%arg0: i32, %arg1: i32) -> (i32, i32) {
    %c0_i32 = arith.constant 0 : i32
    %c0_i32_0 = arith.constant 0 : i32
    %c0_i32_1 = arith.constant 0 : i32
    return %c0_i32, %c0_i32_0 : i32, i32
  }
  func.func @transform_10(%arg0: i32, %arg1: i32) -> (i32, i32) {
    %c0_i32 = arith.constant 0 : i32
    %c0_i32_0 = arith.constant 0 : i32
    %c0_i32_1 = arith.constant 0 : i32
    return %c0_i32, %c0_i32_0 : i32, i32
  }
}

</mosaic_0001>

<bundles_post_ra>
// kernel: tpu_custom_call.1
= control target key start
LH: loop header
LB: loop body
LE: loop exit
PB: predicated region body
PF: predicated region fallthrough
CT: control target
= control target key end

     0   :  { %s3903_s0 = inlined_call_operand.hbm [shape: bf16[256,256], index: 0, kind: input, shape index: {}]   ;;  %s3904_s1 = inlined_call_operand.hbm [shape: bf16[256,128], index: 1, kind: input, shape index: {}]   ;;  %s3905_s2 = inlined_call_operand.hbm [shape: bf16[2,128,128], index: 2, kind: input, shape index: {}]   ;;  %s3906_s3 = inlined_call_operand.hbm [shape: f32[2,1,128], index: 3, kind: input, shape index: {}]   ;;  %s3907_s4 = inlined_call_operand.vmem [shape: bf16[8,256], index: 4, kind: input, shape index: {}]   ;;  %s3908_s5 = inlined_call_operand.vmem [shape: f32[8,1], index: 5, kind: input, shape index: {}]   ;;  %s3909_s6 = inlined_call_operand.hbm [shape: f32[128,128], index: 6, kind: input, shape index: {}]   ;;  %s3910_s7 = inlined_call_operand.vmem [shape: f32[1,128], index: 7, kind: input, shape index: {}]   ;;  %s3911_s8 = inlined_call_operand.hbm [shape: f32[128,128], index: 8, kind: input, shape index: {}]   ;;  %s3912_s9 = inlined_call_operand.vmem [shape: f32[1,128], index: 9, kind: input, shape index: {}]   ;;  %s3913_s10 = inlined_call_operand.hbm [shape: f32[8,128], index: 10, kind: output, shape index: {}]  }
   0x1   :  { %3921 = sst [smem:[#allocation28_spill]] %s3905_s2 }
   0x2   :  { %3922 = sst [smem:[#allocation29_spill]] %s3908_s5 }
   0x3   :  { %3923 = sst [smem:[#allocation30_spill]] %s3909_s6 }
   0x4   :  { %3924 = sst [smem:[#allocation31_spill]] %s3910_s7 }
   0x5   :  { %3925 = sst [smem:[#allocation32_spill]] %s3912_s9 }
   0x6   :  { %3926 = sst [smem:[#allocation33_spill]] %s3913_s10 }
   0x7   :  { %15 = vsyncpa [#allocation6], 0 }
   0x8   :  { %16 = vsyncpa [#allocation9], 0 }
   0x9   :  { %18 = vsyncpa [#allocation9 + $0x1], 0 }
   0xa   :  { %19 = vsyncpa [#allocation12], 0 }
   0xb   :  { %20 = vsyncpa [#allocation7], 0  ;;  %s3519_s13 = smov 0   ;;  %s3521_s14 = smov 0  }
   0xc   :  { %s3523_s15 = smov 0   ;;  %s3525_s16 = smov 0  }
   0xd   :  { %s3527_s17 = smov 0   ;;  %s3529_s18 = smov 0  }
   0xe   :  { %s3531_s19 = smov 0   ;;  %s3533_s20 = smov 0  }
   0xf LB: > { %3927 = sst [smem:[#allocation24_spill]] %s3443_s18  ;;  %s3558_s21 = sadd.s32 4294967295, %s3451_s20   ;;  %s3451_s20 = sphi %s3533_s20, %s26_s20   ;;  %s3447_s19 = sphi %s3531_s19, %s3953_s19   ;;  %s3443_s18 = sphi %s3529_s18, %s3947_s18   ;;  %s3439_s17 = sphi %s3527_s17, %s3952_s17   ;;  %s3435_s16 = sphi %s3525_s16, %s3946_s16   ;;  %s3431_s15 = sphi %s3523_s15, %s3951_s15   ;;  %s3427_s14 = sphi %s3521_s14, %s3950_s14   ;;  %s3423_s13 = sphi %s3519_s13, %s3949_s13  }
  0x10   : > { %p79_p0 = scmp.ne.s32.totalorder %s3427_s14, %s3423_s13  ;;  %p80_p1 = scmp.eq.s32.totalorder %s3558_s21, 0 }
  0x11   : > { %p2236_p2 = scmp.ge.s32.totalorder %s3451_s20, 1  ;;  %p268_p3 = scmp.lt.s32.totalorder %s3451_s20, 5 }
  0x12   : > { %p3566_p4 = por %p80_p1, %p79_p0  ;;  %s3930_s6 = sld [smem:[#allocation30_spill]] }
  0x13   : > { %p3570_p5 = pnand %p2236_p2, %p268_p3  ;;  %s3453_s27 = smov [#allocation11]  }
  0x14   : > { %s298_s28 = sshll.u32 %s3453_s27, 4  ;;  %s3914_s30 = smov 128   ;;  %s299_s28 = int_to_ptr.vmem [resolvable:$true] %s298_s28 }
  0x15   : > { %p3054_p6 = pneg %p3570_p5  ;;  %s3916_s11 = smov 8  }
  0x16   : > { %s35_s12 = sadd.s32 1, %s3443_s18  ;;  %s38_s13 = sadd.s32 1, %s3447_s19 }
  0x17   : > { %p3581_p7 = pnand %p3054_p6, %p80_p1  ;;  %p36_p8 = scmp.ge.s32.totalorder %s35_s12, 2 }
  0x18   : > { %s296_s26 = sshll.u32 %s3930_s6, 4  ;;  %s66_s24 = sadd.s32 1, %s3431_s15  ;;  %s297_s26 = int_to_ptr.hbm [resolvable:$true] %s296_s26 }
  0x19   : > { %3060 = dma.hbm_to_vmem [thread:$0]  (!%p3581_p7), %s297_s26, 2048, %s299_s28, [#allocation12], %s3914_s30, %s3914_s30, %s3916_s11  }
  0x1a   : > { %p73_p9 = scmp.ne.s32.totalorder %s3431_s15, %s3427_s14  ;;  %s3955_s12 = smov (%p36_p8, %s35_s12), 0 }
  0x1b   : > { %3932 = sst [smem:[#allocation25_spill]] %s3955_s12  ;;  %s3957_s13 = smov (!%p36_p8, %s38_s13), %s3447_s19 }
  0x1c   : > { %p74_p10 = scmp.eq.s32.totalorder %s3451_s20, 0  ;;  %p3074_p11 = scmp.lt.s32.totalorder %s3451_s20, 4 }
  0x1d   : > { %p40_p12 = scmp.ge.s32.totalorder %s3957_s13, 2  ;;  %s332_s25 = sand.u32 1, %s3451_s20  }
  0x1e   : > { %p3601_p13 = por %p74_p10, %p73_p9  ;;  %s3920_s26 = sand.u32 1, %s3431_s15  }
  0x1f   : > { %s3959_s13 = smov (%p40_p12, %s3957_s13), 0  ;;  %s2764_s28 = sshll.u32 %s3447_s19, 6 }
  0x20   : > { %3934 = sst [smem:[#allocation26_spill]] %s3959_s13  ;;  %s63_s30 = ssub.s32 %s3447_s19, %s3959_s13 }
  0x21   : > { %s2241_s11 = sshll.u32 %s3920_s26, 6  ;;  %p64_p0 = scmp.eq.s32.totalorder %s63_s30, 0 }
  0x22   : > { %s3935_s2 = sld [smem:[#allocation28_spill]]  ;;  %s336_s10 = scalar_lea.vmem [#allocation8], %s2241_s11 }
  0x23   : > { %s344_s9 = sshll.u32 %s336_s10, 4  ;;  %p3623_p2 = pnand %p3074_p11, %p3601_p13  ;;  %s345_s9 = int_to_ptr.vmem [resolvable:$true] %s344_s9 }
  0x24   : > { %s3617_s7 = scalar_select %p64_p0, %s3431_s15, %s66_s24  }
  0x25   : > { %s333_s30 = scalar_lea.sflag [#allocation9], %s332_s25  ;;  %s3456_s26 = smov 64  }
  0x26   : > { %3936 = sst [smem:[#allocation27_spill]] %s3617_s7  ;;  %s3457_s6 = smov 4  }
  0x27   : > { %s3458_s12 = smov [#allocation5]   ;;  %s3938_s25 = smov 8  }
  0x28   : > { %s341_s18 = scalar_lea.hbm %s3935_s2, %s2764_s28  ;;  %s281_s24 = sshll.u32 %s3458_s12, 4  ;;  %s282_s24 = int_to_ptr.vmem [resolvable:$true] %s281_s24 }
  0x29   : > { %s342_s5 = sshll.u32 %s341_s18, 4  ;;  %s279_s18 = sshll.u32 %s3903_s0, 4  ;;  %s343_s5 = int_to_ptr.hbm [resolvable:$true] %s342_s5  ;;  %s280_s18 = int_to_ptr.hbm [resolvable:$true] %s279_s18 }
  0x2a   : > { %3067 = dma.hbm_to_vmem [thread:$0]  (!%p3623_p2), %s343_s5, 1024, %s345_s9, %s333_s30, %s3456_s26, %s3456_s26, %s3457_s6  }
  0x2b   : > { %s313_s2 = sshll.u32 %s3911_s8, 4  ;;  %s3939_s7 = smov 128   ;;  %s314_s2 = int_to_ptr.hbm [resolvable:$true] %s313_s2 }
  0x2c   : > { %3057 = dma.hbm_to_vmem [thread:$0]  (!%p3581_p7), %s280_s18, 4096, %s282_s24, [#allocation6], %s3939_s7, %s3939_s7, %s3938_s25  }
  0x2d   : > { %s3459_s5 = smov [#allocation13]   ;;  %s360_s10 = scalar_lea.hbm %s3906_s3, %s3447_s19 }
  0x2e   : > { %s315_s9 = sshll.u32 %s3459_s5, 4  ;;  %s362_s11 = sshll.u32 %s360_s10, 4  ;;  %s316_s9 = int_to_ptr.vmem [resolvable:$true] %s315_s9  ;;  %s363_s11 = int_to_ptr.hbm [resolvable:$true] %s362_s11 }
  0x2f   : > { %3063 = dma.hbm_to_vmem [thread:$0]  (!%p3581_p7), %s314_s2, 2048, %s316_s9, [#allocation12], %s3939_s7, %s3939_s7, %s3938_s25  }
  0x30   : > { %s3940_s12 = sand.u32 1, %s3431_s15   ;;  %380 = sbr.rel (%p3570_p5) target bundleno = 1904 (0x770), region = 56 }
  0x31   : > { %s357_s27 = scalar_lea.vmem [#allocation10], %s3940_s12 }
  0x32   : > { %s364_s28 = sshll.u32 %s357_s27, 4  ;;  %s365_s28 = int_to_ptr.vmem [resolvable:$true] %s364_s28 }
  0x33   : > { %3070 = dma.hbm_to_vmem [thread:$0]  (!%p3623_p2), %s363_s11, 16, %s365_s28, %s333_s30  }
  0x35   : > { %3402 = dma.done.wait (%p80_p1), [#allocation6], 4096  }
  0x36   : > { %3404 = vsyncadd (%p80_p1), [#allocation6], 4294963200  ;;  %s387_s2 = sand.u32 1, %s3558_s21   ;;  %s389_s7 = sand.u32 1, %s3427_s14  }
  0x37   : > { %s2246_s29 = sshll.u32 %s389_s7, 6  ;;  %s388_s18 = scalar_lea.sflag [#allocation9], %s387_s2 }
  0x38   : > { %s3661_s24 = scalar_lea.vmem [#allocation8], %s2246_s29 }
  0x39   : > { %3406 = dma.done.wait (%p3566_p4), %s388_s18, 1040  }
  0x3a   : > { %3408 = vsyncadd (%p3566_p4), %s388_s18, 4294966256  ;;  %s3667_s23 = scalar_lea.vmem [#allocation10], %s389_s7 }
  0x3b   : > { %3410 = dma.done.wait (%p80_p1), [#allocation12], 4096  }
  0x3c   : > { %3412 = vsyncadd (%p80_p1), [#allocation12], 4294963200  ;;  %p449_p3 = scmp.lt.s32.totalorder %s3435_s16, 1  ;;  %p453_p5 = scmp.eq.s32.totalorder %s3439_s17, 0 }
  0x3d   : > { %p454_p6 = scmp.eq.s32.totalorder %s3435_s16, 0  ;;  %s466_s22 = sshll.u32 %s3904_s1, 4  ;;  %s467_s22 = int_to_ptr.hbm [resolvable:$true] %s466_s22 }
  0x3e   : > { %s450_s25 = scalar_select %p449_p3, %s3435_s16, 1 }
  0x3f   : > { %p455_p4 = pnand %p454_p6, %p453_p5  ;;  %s3460_s10 = smov [#allocation2]  }
  0x40   : > { %s2249_s5 = sshll.u32 %s450_s25, 2  ;;  %s468_s11 = sshll.u32 %s3460_s10, 4  ;;  %s469_s11 = int_to_ptr.vmem [resolvable:$true] %s468_s11 }
  0x41   : > { %s3685_s6 = scalar_lea.vmem %s3907_s4, %s2249_s5  ;;  %p3047_p1 = pneg %p455_p4 }
  0x42   : > { %3048 = dma.hbm_to_vmem [thread:$0]  (!%p455_p4), %s467_s22, 2048, %s469_s11, [#allocation4] }
  0x43   : > { %3414 = dma.done.wait (%p3047_p1), [#allocation4], 2048 }
  0x44   : > { %3416 = vsyncadd (%p3047_p1), [#allocation4], 4294965248  ;;  %p476_p7 = scmp.eq.s32.totalorder %s3439_s17, 1 }
  0x46   : > { %p477_p8 = pnand %p476_p7, %p454_p6 }
  0x48   : > { %480 = sbr.rel (%p477_p8) target bundleno = 79 (0x4f), region = 88 }
  0x4d   : > { %v3461_v0 = vmov 0.0  }
  0x4e   : > { %481 = vst [vmem:[#allocation3] sm:$0xff] %v3461_v0 }
  0x4f PF: > { %s3693_s12 = sshll.u32 %s3435_s16, 7  ;;  %p484_p9 = scmp.lt.s32.totalorder %s3439_s17, 0 }
  0x50   : > { %s485_s27 = ssub.s32 0, %s3439_s17  ;;  %p483_p11 = scmp.lt.s32.totalorder %s3439_s17, 1 }
  0x51   : > { %s2251_s28 = smin.u32 %s3439_s17, %s485_s27 }
  0x52   : > { %s487_s2 = sand.u32 1, %s2251_s28  }
  0x53   : > { %s488_s7 = ssub.s32 0, %s487_s2 }
  0x54   : > { %s3961_s7 = smov (!%p484_p9, %s488_s7), %s487_s2 }
  0x55   : > { %p2253_p10 = scmp.lt.s32.totalorder %s3961_s7, 0  ;;  %s494_s29 = sadd.s32 2, %s3961_s7 }
  0x57   : > { %s3963_s29 = smov (!%p2253_p10, %s494_s29), %s3961_s7 }
  0x58   : > { %p496_p12 = scmp.eq.s32.totalorder %s3963_s29, 0 }
  0x5a   : > { %p497_p13 = pnand %p496_p12, %p483_p11 }
  0x5b   : > { %s3705_s18 = scalar_lea.vmem (!%p497_p13), [#allocation5], %s3693_s12  ;;  %s501_s13 = sshra.s32 (!%p497_p13), %s3693_s12, 3 }
  0x5c   : > { %500 = sbr.rel (%p497_p13) target bundleno = 495 (0x1ef), region = 92  ;;  %s2416_s30 = sshll.u32 (!%p497_p13), %s501_s13, 2 }
  0x5d   : > { %s3749_s22 = scalar_lea.vmem (!%p497_p13), [#allocation2], %s2416_s30 }
  0x61   : > { %v2789_v1 = vld [vmem:[#allocation2 + $0x38] sm:$0xff]  ;;  %v2788_v3 = vld [vmem:[#allocation2 + $0x30] sm:$0xff]  ;;  %v2787_v5 = vld [vmem:[#allocation2 + $0x28] sm:$0xff] }
  0x62   : > { %v2797_v2 = vld [vmem:[#allocation2 + $0x78] sm:$0xff]  ;;  %730 = vmatpush.bf16.msra.mxu0 %v2789_v1  ;;  %2983 = vmatpush.bf16.msra.mxu3 %v2789_v1  ;;  %v2796_v4 = vld [vmem:[#allocation2 + $0x70] sm:$0xff]  ;;  %v2795_v6 = vld [vmem:[#allocation2 + $0x68] sm:$0xff] }
  0x63   : > { %779 = vmatpush.bf16.msra.mxu1 %v2797_v2  ;;  %v2786_v7 = vld [vmem:[#allocation2 + $0x20] sm:$0xff]  ;;  %v2785_v9 = vld [vmem:[#allocation2 + $0x18] sm:$0xff]  ;;  %v2784_v11 = vld [vmem:[#allocation2 + $0x10] sm:$0xff] }
  0x64   : > { %v2794_v8 = vld [vmem:[#allocation2 + $0x60] sm:$0xff]  ;;  %v2793_v10 = vld [vmem:[#allocation2 + $0x58] sm:$0xff]  ;;  %v2792_v12 = vld [vmem:[#allocation2 + $0x50] sm:$0xff] }
  0x65   : > { %v2783_v13 = vld [vmem:[#allocation2 + $0x8] sm:$0xff]  ;;  %v2782_v15 = vld [vmem:[#allocation2] sm:$0xff]  ;;  %v2266_v26 = vld [vmem:[%s3705_s18 + $0x10] sm:$0xf] }
  0x66   : > { %731 = vmatpush.bf16.msra.mxu0 %v2788_v3  ;;  %2984 = vmatpush.bf16.msra.mxu3 %v2788_v3  ;;  %v2791_v14 = vld [vmem:[#allocation2 + $0x48] sm:$0xff]  ;;  %v2258_v16 = vld [vmem:[%s3705_s18] sm:$0xf]  ;;  %v2766_v21 = vld [vmem:[%s3705_s18 + $0x4] sm:$0xf] }
  0x67   : > { %780 = vmatpush.bf16.msra.mxu1 %v2796_v4  ;;  %v2767_v17 = vld [vmem:[%s3705_s18 + $0x4] sm:$0xf0]  ;;  %v2306_v18 = vld [vmem:[%s3705_s18 + $0x60] sm:$0xf]  ;;  %v2260_v22 = vld [vmem:[%s3705_s18 + $0x8] sm:$0xf0] }
  0x68   : > { %v2779_v19 = vld [vmem:[%s3705_s18 + $0x64] sm:$0xf0]  ;;  %v2790_v20 = vld [vmem:[#allocation2 + $0x40] sm:$0xff]  ;;  %v2259_v23 = vor.u32 %v2767_v17, %v2258_v16  ;;  %v2263_v25 = vor.u32 %v2766_v21, %v2260_v22  ;;  %v2769_v27 = vld [vmem:[%s3705_s18 + $0x14] sm:$0xf0] }
  0x69   : > { %v2307_v24 = vor.u32 %v2779_v19, %v2306_v18  ;;  %v2314_v28 = vld [vmem:[%s3705_s18 + $0x70] sm:$0xf]  ;;  %v2781_v29 = vld [vmem:[%s3705_s18 + $0x74] sm:$0xf0]  ;;  %v2768_v30 = vld [vmem:[%s3705_s18 + $0x14] sm:$0xf]  ;;  %v2267_v32 = vor.u32 %v2769_v27, %v2266_v26 }
  0x6a   : > { %732 = vmatpush.bf16.msra.mxu0 %v2787_v5  ;;  %2985 = vmatpush.bf16.msra.mxu3 %v2787_v5  ;;  %v2268_v31 = vld [vmem:[%s3705_s18 + $0x18] sm:$0xf0]  ;;  %v2315_v33 = vor.u32 %v2781_v29, %v2314_v28  ;;  %v2274_v35 = vld [vmem:[%s3705_s18 + $0x20] sm:$0xf]  ;;  %v2771_v36 = vld [vmem:[%s3705_s18 + $0x24] sm:$0xf0] }
  0x6b   : > { %781 = vmatpush.bf16.msra.mxu1 %v2795_v6  ;;  %v2271_v34 = vor.u32 %v2768_v30, %v2268_v31  ;;  %v2778_v37 = vld [vmem:[%s3705_s18 + $0x64] sm:$0xf]  ;;  %v2308_v38 = vld [vmem:[%s3705_s18 + $0x68] sm:$0xf0]  ;;  %v2275_v41 = vor.u32 %v2771_v36, %v2274_v35  ;;  %v2282_v44 = vld [vmem:[%s3705_s18 + $0x30] sm:$0xf] }
  0x6c   : > { %v2770_v39 = vld [vmem:[%s3705_s18 + $0x24] sm:$0xf]  ;;  %v2276_v40 = vld [vmem:[%s3705_s18 + $0x28] sm:$0xf0]  ;;  %v2311_v42 = vor.u32 %v2778_v37, %v2308_v38  ;;  %v2773_v45 = vld [vmem:[%s3705_s18 + $0x34] sm:$0xf0] }
  0x6d   : > { %v2279_v43 = vor.u32 %v2770_v39, %v2276_v40  ;;  %v2780_v46 = vld [vmem:[%s3705_s18 + $0x74] sm:$0xf]  ;;  %v2316_v47 = vld [vmem:[%s3705_s18 + $0x78] sm:$0xf0]  ;;  %v2283_v50 = vor.u32 %v2773_v45, %v2282_v44  ;;  %v2805_v53 = vld [vmem:[%s3661_s24 + $0x38] sm:$0xff] }
  0x6e   : > { %733 = vmatpush.bf16.msra.mxu0 %v2786_v7  ;;  %2986 = vmatpush.bf16.msra.mxu3 %v2786_v7  ;;  %v2772_v48 = vld [vmem:[%s3705_s18 + $0x34] sm:$0xf]  ;;  %v2284_v49 = vld [vmem:[%s3705_s18 + $0x38] sm:$0xf0]  ;;  %v2319_v51 = vor.u32 %v2780_v46, %v2316_v47  ;;  %v2290_v56 = vld [vmem:[%s3705_s18 + $0x40] sm:$0xf] }
  0x6f   : > { %782 = vmatpush.bf16.msra.mxu1 %v2794_v8  ;;  %v2287_v52 = vor.u32 %v2772_v48, %v2284_v49  ;;  %904 = vmatpush.bf16.msra.mxu2 %v2805_v53  ;;  %v2804_v54 = vld [vmem:[%s3661_s24 + $0x30] sm:$0xff]  ;;  %v2803_v55 = vld [vmem:[%s3661_s24 + $0x28] sm:$0xff]  ;;  %v2775_v57 = vld [vmem:[%s3705_s18 + $0x44] sm:$0xf0] }
  0x70   : > { %v2774_v58 = vld [vmem:[%s3705_s18 + $0x44] sm:$0xf]  ;;  %v2292_v59 = vld [vmem:[%s3705_s18 + $0x48] sm:$0xf0]  ;;  %v2291_v61 = vor.u32 %v2775_v57, %v2290_v56  ;;  %v2298_v0 = vld [vmem:[%s3705_s18 + $0x50] sm:$0xf] }
  0x71   : > { %v2802_v60 = vld [vmem:[%s3661_s24 + $0x20] sm:$0xff]  ;;  %v2295_v62 = vor.u32 %v2774_v58, %v2292_v59  ;;  %v2801_v63 = vld [vmem:[%s3661_s24 + $0x18] sm:$0xff]  ;;  %v2777_v1 = vld [vmem:[%s3705_s18 + $0x54] sm:$0xf0] }
  0x72   : > { %734 = vmatpush.bf16.msra.mxu0 %v2785_v9  ;;  %2987 = vmatpush.bf16.msra.mxu3 %v2785_v9  ;;  %v2300_v3 = vld [vmem:[%s3705_s18 + $0x58] sm:$0xf0]  ;;  %v2799_v7 = vld [vmem:[%s3661_s24 + $0x8] sm:$0xff] }
  0x73   : > { %783 = vmatpush.bf16.msra.mxu1 %v2793_v10  ;;  %905 = vmatpush.bf16.msra.mxu2 %v2804_v54 }
  0x76   : > { %735 = vmatpush.bf16.msra.mxu0 %v2784_v11  ;;  %2988 = vmatpush.bf16.msra.mxu3 %v2784_v11 }
  0x77   : > { %784 = vmatpush.bf16.msra.mxu1 %v2792_v12  ;;  %906 = vmatpush.bf16.msra.mxu2 %v2803_v55 }
  0x7a   : > { %736 = vmatpush.bf16.msra.mxu0 %v2783_v13  ;;  %2989 = vmatpush.bf16.msra.mxu3 %v2783_v13 }
  0x7b   : > { %785 = vmatpush.bf16.msra.mxu1 %v2791_v14  ;;  %907 = vmatpush.bf16.msra.mxu2 %v2802_v60 }
  0x7e   : > { %737 = vmatpush.bf16.msra.mxu0 %v2782_v15  ;;  %2990 = vmatpush.bf16.msra.mxu3 %v2782_v15 }
  0x7f   : > { %786 = vmatpush.bf16.msra.mxu1 %v2790_v20  ;;  %908 = vmatpush.bf16.msra.mxu2 %v2801_v63 }
  0x81   : > { %738 = vmatmul.bf16.vlgmr.msra.gmra.mxu0 %v2259_v23  ;;  %768 = vmatmul.bf16.vlgmr.msra.gmra.mxu3 %v2307_v24 }
  0x82   : > { %2991 = vmatpush.bf16.msrb.mxu3 %v2797_v2  ;;  %787 = vmatmul.bf16.vlgmr.msra.gmra.mxu1 %v2263_v25  ;;  %v2776_v2 = vld [vmem:[%s3705_s18 + $0x54] sm:$0xf] }
  0x83   : > { %v2303_v5 = vor.u32 %v2776_v2, %v2300_v3  ;;  %v3155_v2 = vld [vmem:[%s3667_s23] ss:$0 sm:$0xff] }
  0x86   : > { %2992 = vmatpush.bf16.msrb.mxu3 %v2796_v4  ;;  %v2299_v4 = vor.u32 %v2777_v1, %v2298_v0 }
  0x8a   : > { %2993 = vmatpush.bf16.msrb.mxu3 %v2795_v6  ;;  %v2800_v6 = vld [vmem:[%s3661_s24 + $0x10] sm:$0xff] }
  0x8b   : > { %909 = vmatpush.bf16.msra.mxu2 %v2800_v6 }
  0x8e   : > { %2994 = vmatpush.bf16.msrb.mxu3 %v2794_v8  ;;  %v2798_v8 = vld [vmem:[%s3661_s24] sm:$0xff] }
  0x8f   : > { %910 = vmatpush.bf16.msra.mxu2 %v2799_v7 }
  0x91   : > { %743 = vmatmul.bf16.gmra.mxu0 %v2267_v32  ;;  %773 = vmatmul.bf16.gmra.mxu3 %v2315_v33 }
  0x92   : > { %2995 = vmatpush.bf16.msrb.mxu3 %v2793_v10  ;;  %792 = vmatmul.bf16.gmra.mxu1 %v2271_v34 }
  0x93   : > { %911 = vmatpush.bf16.msra.mxu2 %v2798_v8 }
  0x96   : > { %2996 = vmatpush.bf16.msrb.mxu3 %v2792_v12 }
  0x9a   : > { %2997 = vmatpush.bf16.msrb.mxu3 %v2791_v14 }
  0x9e   : > { %2998 = vmatpush.bf16.msrb.mxu3 %v2790_v20 }
  0xa1   : > { %748 = vmatmul.bf16.gmra.mxu0 %v2275_v41  ;;  %817 = vmatmul.bf16.vlgmr.msrb.gmra.mxu3 %v2311_v42 }
  0xa2   : > { %797 = vmatmul.bf16.gmra.mxu1 %v2279_v43  ;;  %2999 = vmatpush.bf16.msra.mxu3 %v2805_v53 }
  0xa6   : > { %3000 = vmatpush.bf16.msra.mxu3 %v2804_v54 }
  0xaa   : > { %3001 = vmatpush.bf16.msra.mxu3 %v2803_v55 }
  0xae   : > { %3002 = vmatpush.bf16.msra.mxu3 %v2802_v60 }
  0xb1   : > { %753 = vmatmul.bf16.gmra.mxu0 %v2283_v50  ;;  %822 = vmatmul.bf16.gmra.mxu3 %v2319_v51 }
  0xb2   : > { %802 = vmatmul.bf16.gmra.mxu1 %v2287_v52  ;;  %3003 = vmatpush.bf16.msra.mxu3 %v2801_v63 }
  0xb6   : > { %3004 = vmatpush.bf16.msra.mxu3 %v2800_v6 }
  0xba   : > { %3005 = vmatpush.bf16.msra.mxu3 %v2799_v7 }
  0xbe   : > { %3006 = vmatpush.bf16.msra.mxu3 %v2798_v8 }
  0xc1   : > { %758 = vmatmul.bf16.gmra.mxu0 %v2291_v61 }
  0xc2   : > { %807 = vmatmul.bf16.gmra.mxu1 %v2295_v62 }
  0xd1   : > { %763 = vmatmul.bf16.gmra.mxu0 %v2299_v4 }
  0xd2   : > { %812 = vmatmul.bf16.gmra.mxu1 %v2303_v5 }
  0xfe   : > { %v739_v9 = vpop.f32.mrf.mxu0 }
  0xff   : > { %v788_v10 = vpop.f32.mrf.mxu1 }
 0x100   : > { %v789_v14 = vadd.f32 %v788_v10, %v739_v9 }
 0x104   : > { %v769_v11 = vpop.f32.mrf.mxu3 }
 0x106   : > { %v741_v12 = vpop.f32.mrf.mxu0 }
 0x107   : > { %v790_v13 = vpop.f32.mrf.mxu1 }
 0x108   : > { %v791_v15 = vadd.f32 %v790_v13, %v741_v12 }
 0x10a   : > { %v828_v16 = vpack.c.bf16 %v791_v15, %v789_v14 }
 0x10c   : > { %912 = vmatmul.bf16.vlgmr.msra.gmra.mxu2 %v828_v16  ;;  %v771_v17 = vpop.f32.mrf.mxu3 }
 0x10e   : > { %v744_v18 = vpop.f32.mrf.mxu0 }
 0x10f   : > { %v793_v19 = vpop.f32.mrf.mxu1 }
 0x110   : > { %v794_v23 = vadd.f32 %v793_v19, %v744_v18 }
 0x114   : > { %v774_v20 = vpop.f32.mrf.mxu3 }
 0x116   : > { %v746_v21 = vpop.f32.mrf.mxu0 }
 0x117   : > { %v795_v22 = vpop.f32.mrf.mxu1 }
 0x118   : > { %v796_v24 = vadd.f32 %v795_v22, %v746_v21 }
 0x11a   : > { %v829_v25 = vpack.c.bf16 %v796_v24, %v794_v23 }
 0x11c   : > { %917 = vmatmul.bf16.gmra.mxu2 %v829_v25  ;;  %v776_v26 = vpop.f32.mrf.mxu3 }
 0x11e   : > { %v749_v27 = vpop.f32.mrf.mxu0 }
 0x11f   : > { %v798_v28 = vpop.f32.mrf.mxu1 }
 0x120   : > { %v799_v32 = vadd.f32 %v798_v28, %v749_v27 }
 0x124   : > { %v818_v29 = vpop.f32.mrf.mxu3 }
 0x125   : > { %v819_v36 = vadd.f32 %v818_v29, %v769_v11 }
 0x126   : > { %v751_v30 = vpop.f32.mrf.mxu0 }
 0x127   : > { %v800_v31 = vpop.f32.mrf.mxu1 }
 0x128   : > { %v801_v33 = vadd.f32 %v800_v31, %v751_v30 }
 0x12a   : > { %v830_v34 = vpack.c.bf16 %v801_v33, %v799_v32 }
 0x12c   : > { %922 = vmatmul.bf16.gmra.mxu2 %v830_v34  ;;  %v820_v35 = vpop.f32.mrf.mxu3 }
 0x12d   : > { %v821_v37 = vadd.f32 %v820_v35, %v771_v17 }
 0x12e   : > { %v754_v38 = vpop.f32.mrf.mxu0 }
 0x12f   : > { %v834_v39 = vpack.c.bf16 %v821_v37, %v819_v36  ;;  %v803_v40 = vpop.f32.mrf.mxu1 }
 0x130   : > { %v804_v44 = vadd.f32 %v803_v40, %v754_v38 }
 0x131   : > { %942 = vmatmul.bf16.vlgmr.msra.gmra.mxu3 %v834_v39 }
 0x134   : > { %v823_v41 = vpop.f32.mrf.mxu3 }
 0x135   : > { %v824_v48 = vadd.f32 %v823_v41, %v774_v20 }
 0x136   : > { %v756_v42 = vpop.f32.mrf.mxu0 }
 0x137   : > { %v805_v43 = vpop.f32.mrf.mxu1 }
 0x138   : > { %v806_v45 = vadd.f32 %v805_v43, %v756_v42 }
 0x13a   : > { %v831_v46 = vpack.c.bf16 %v806_v45, %v804_v44 }
 0x13c   : > { %927 = vmatmul.bf16.gmra.mxu2 %v831_v46  ;;  %v825_v47 = vpop.f32.mrf.mxu3 }
 0x13d   : > { %v826_v49 = vadd.f32 %v825_v47, %v776_v26 }
 0x13e   : > { %v759_v50 = vpop.f32.mrf.mxu0 }
 0x13f   : > { %v808_v51 = vpop.f32.mrf.mxu1  ;;  %v835_v52 = vpack.c.bf16 %v826_v49, %v824_v48 }
 0x140   : > { %v809_v55 = vadd.f32 %v808_v51, %v759_v50 }
 0x141   : > { %947 = vmatmul.bf16.gmra.mxu3 %v835_v52 }
 0x146   : > { %v761_v53 = vpop.f32.mrf.mxu0 }
 0x147   : > { %v810_v54 = vpop.f32.mrf.mxu1 }
 0x148   : > { %v811_v56 = vadd.f32 %v810_v54, %v761_v53 }
 0x14a   : > { %v832_v57 = vpack.c.bf16 %v811_v56, %v809_v55 }
 0x14c   : > { %932 = vmatmul.bf16.gmra.mxu2 %v832_v57 }
 0x14e   : > { %v764_v58 = vpop.f32.mrf.mxu0 }
 0x14f   : > { %v813_v59 = vpop.f32.mrf.mxu1 }
 0x150   : > { %v814_v62 = vadd.f32 %v813_v59, %v764_v58 }
 0x156   : > { %v766_v60 = vpop.f32.mrf.mxu0 }
 0x157   : > { %v815_v61 = vpop.f32.mrf.mxu1 }
 0x158   : > { %v816_v63 = vadd.f32 %v815_v61, %v766_v60 }
 0x15a   : > { %v833_v0 = vpack.c.bf16 %v816_v63, %v814_v62 }
 0x15c   : > { %937 = vmatmul.bf16.gmra.mxu2 %v833_v0 }
 0x18f   : > { %v913_v1 = vpop.f32.mrf.mxu2 }
 0x190   : > { %v914_v3 = vadd.f32 %v3155_v2, %v913_v1 }
 0x192   : > { %v953_v6 = vmax.f32 %v914_v3, 0.0 }
 0x197   : > { %v915_v4 = vpop.f32.mrf.mxu2 }
 0x198   : > { %v916_v5 = vadd.f32 %v3155_v2, %v915_v4 }
 0x19a   : > { %v954_v7 = vmax.f32 %v916_v5, 0.0 }
 0x19c   : > { %v2891_v8 = vpack.c.bf16 %v954_v7, %v953_v6 }
 0x19e   : > { %2968 = vst [vmem:[%s3749_s22 + $0x80] sm:$0xff] %v2891_v8  }
 0x19f   : > { %v918_v9 = vpop.f32.mrf.mxu2 }
 0x1a0   : > { %v919_v10 = vadd.f32 %v3155_v2, %v918_v9 }
 0x1a2   : > { %v955_v13 = vmax.f32 %v919_v10, 0.0 }
 0x1a7   : > { %v920_v11 = vpop.f32.mrf.mxu2 }
 0x1a8   : > { %v921_v12 = vadd.f32 %v3155_v2, %v920_v11 }
 0x1aa   : > { %v956_v14 = vmax.f32 %v921_v12, 0.0 }
 0x1ac   : > { %v2896_v15 = vpack.c.bf16 %v956_v14, %v955_v13 }
 0x1ae   : > { %2969 = vst [vmem:[%s3749_s22 + $0x88] sm:$0xff] %v2896_v15  }
 0x1af   : > { %v923_v16 = vpop.f32.mrf.mxu2 }
 0x1b0   : > { %v924_v18 = vadd.f32 %v3155_v2, %v923_v16 }
 0x1b2   : > { %v957_v21 = vmax.f32 %v924_v18, 0.0 }
 0x1b4   : > { %v943_v17 = vpop.f32.mrf.mxu3 }
 0x1b5   : > { %v944_v23 = vadd.f32 %v3155_v2, %v943_v17 }
 0x1b7   : > { %v925_v19 = vpop.f32.mrf.mxu2  ;;  %v965_v27 = vmax.f32 %v944_v23, 0.0 }
 0x1b8   : > { %v926_v20 = vadd.f32 %v3155_v2, %v925_v19 }
 0x1ba   : > { %v958_v22 = vmax.f32 %v926_v20, 0.0 }
 0x1bc   : > { %v2901_v24 = vpack.c.bf16 %v958_v22, %v957_v21  ;;  %v945_v25 = vpop.f32.mrf.mxu3 }
 0x1bd   : > { %v946_v26 = vadd.f32 %v3155_v2, %v945_v25 }
 0x1be   : > { %2970 = vst [vmem:[%s3749_s22 + $0x90] sm:$0xff] %v2901_v24  }
 0x1bf   : > { %v966_v28 = vmax.f32 %v946_v26, 0.0  ;;  %v928_v29 = vpop.f32.mrf.mxu2 }
 0x1c0   : > { %v929_v32 = vadd.f32 %v3155_v2, %v928_v29 }
 0x1c1   : > { %v2921_v30 = vpack.c.bf16 %v966_v28, %v965_v27 }
 0x1c2   : > { %v959_v35 = vmax.f32 %v929_v32, 0.0 }
 0x1c3   : > { %2974 = vst [vmem:[%s3749_s22 + $0xb0] sm:$0xff] %v2921_v30  }
 0x1c4   : > { %v948_v31 = vpop.f32.mrf.mxu3 }
 0x1c5   : > { %v949_v37 = vadd.f32 %v3155_v2, %v948_v31 }
 0x1c7   : > { %v930_v33 = vpop.f32.mrf.mxu2  ;;  %v967_v41 = vmax.f32 %v949_v37, 0.0 }
 0x1c8   : > { %v931_v34 = vadd.f32 %v3155_v2, %v930_v33 }
 0x1ca   : > { %v960_v36 = vmax.f32 %v931_v34, 0.0 }
 0x1cc   : > { %v2906_v38 = vpack.c.bf16 %v960_v36, %v959_v35  ;;  %v950_v39 = vpop.f32.mrf.mxu3 }
 0x1cd   : > { %v951_v40 = vadd.f32 %v3155_v2, %v950_v39 }
 0x1ce   : > { %2971 = vst [vmem:[%s3749_s22 + $0x98] sm:$0xff] %v2906_v38  }
 0x1cf   : > { %v968_v42 = vmax.f32 %v951_v40, 0.0  ;;  %v933_v43 = vpop.f32.mrf.mxu2 }
 0x1d0   : > { %v934_v45 = vadd.f32 %v3155_v2, %v933_v43 }
 0x1d1   : > { %v2926_v44 = vpack.c.bf16 %v968_v42, %v967_v41 }
 0x1d2   : > { %v961_v48 = vmax.f32 %v934_v45, 0.0 }
 0x1d3   : > { %2975 = vst [vmem:[%s3749_s22 + $0xb8] sm:$0xff] %v2926_v44  }
 0x1d7   : > { %v935_v46 = vpop.f32.mrf.mxu2 }
 0x1d8   : > { %v936_v47 = vadd.f32 %v3155_v2, %v935_v46 }
 0x1da   : > { %v962_v49 = vmax.f32 %v936_v47, 0.0 }
 0x1dc   : > { %v2911_v50 = vpack.c.bf16 %v962_v49, %v961_v48 }
 0x1de   : > { %2972 = vst [vmem:[%s3749_s22 + $0xa0] sm:$0xff] %v2911_v50  }
 0x1df   : > { %v938_v51 = vpop.f32.mrf.mxu2 }
 0x1e0   : > { %v939_v52 = vadd.f32 %v3155_v2, %v938_v51 }
 0x1e2   : > { %v963_v55 = vmax.f32 %v939_v52, 0.0 }
 0x1e7   : > { %v940_v53 = vpop.f32.mrf.mxu2 }
 0x1e8   : > { %v941_v54 = vadd.f32 %v3155_v2, %v940_v53 }
 0x1ea   : > { %v964_v56 = vmax.f32 %v941_v54, 0.0 }
 0x1ec   : > { %v2916_v57 = vpack.c.bf16 %v964_v56, %v963_v55 }
 0x1ee   : > { %2973 = vst [vmem:[%s3749_s22 + $0xa8] sm:$0xff] %v2916_v57  }
 0x1ef PF: > { %p1004_p0 = scmp.eq.s32.totalorder %s3963_s29, 1 }
 0x1f1   : > { %p1005_p2 = pnand %p1004_p0, %p483_p11 }
 0x1f2   : > { %s3763_s25 = scalar_lea.vmem (!%p1005_p2), [#allocation5], %s3693_s12  ;;  %s1009_s5 = sshra.s32 (!%p1005_p2), %s3693_s12, 3 }
 0x1f3   : > { %1008 = sbr.rel (%p1005_p2) target bundleno = 902 (0x386), region = 96  ;;  %s2595_s9 = sshll.u32 (!%p1005_p2), %s1009_s5, 2 }
 0x1f4   : > { %s3807_s26 = scalar_lea.vmem (!%p1005_p2), [#allocation2], %s2595_s9 }
 0x1f8   : > { %v2830_v58 = vld [vmem:[#allocation2 + $0xb8] sm:$0xff]  ;;  %v2829_v60 = vld [vmem:[#allocation2 + $0xb0] sm:$0xff]  ;;  %v2828_v62 = vld [vmem:[#allocation2 + $0xa8] sm:$0xff] }
 0x1f9   : > { %v2838_v59 = vld [vmem:[#allocation2 + $0xf8] sm:$0xff]  ;;  %1239 = vmatpush.bf16.msra.mxu0 %v2830_v58  ;;  %3007 = vmatpush.bf16.msra.mxu3 %v2830_v58  ;;  %v2837_v61 = vld [vmem:[#allocation2 + $0xf0] sm:$0xff]  ;;  %v2836_v63 = vld [vmem:[#allocation2 + $0xe8] sm:$0xff] }
 0x1fa   : > { %1288 = vmatpush.bf16.msra.mxu1 %v2838_v59  ;;  %v2827_v0 = vld [vmem:[#allocation2 + $0xa0] sm:$0xff]  ;;  %v2826_v2 = vld [vmem:[#allocation2 + $0x98] sm:$0xff]  ;;  %v2825_v4 = vld [vmem:[#allocation2 + $0x90] sm:$0xff] }
 0x1fb   : > { %v2835_v1 = vld [vmem:[#allocation2 + $0xe0] sm:$0xff]  ;;  %v2834_v3 = vld [vmem:[#allocation2 + $0xd8] sm:$0xff]  ;;  %v2833_v5 = vld [vmem:[#allocation2 + $0xd0] sm:$0xff] }
 0x1fc   : > { %v2824_v6 = vld [vmem:[#allocation2 + $0x88] sm:$0xff]  ;;  %v2823_v8 = vld [vmem:[#allocation2 + $0x80] sm:$0xff]  ;;  %v2445_v19 = vld [vmem:[%s3763_s25 + $0x10] sm:$0xf] }
 0x1fd   : > { %1240 = vmatpush.bf16.msra.mxu0 %v2829_v60  ;;  %3008 = vmatpush.bf16.msra.mxu3 %v2829_v60  ;;  %v2832_v7 = vld [vmem:[#allocation2 + $0xc8] sm:$0xff]  ;;  %v2437_v9 = vld [vmem:[%s3763_s25] sm:$0xf]  ;;  %v2807_v14 = vld [vmem:[%s3763_s25 + $0x4] sm:$0xf] }
 0x1fe   : > { %1289 = vmatpush.bf16.msra.mxu1 %v2837_v61  ;;  %v2808_v10 = vld [vmem:[%s3763_s25 + $0x4] sm:$0xf0]  ;;  %v2485_v11 = vld [vmem:[%s3763_s25 + $0x60] sm:$0xf]  ;;  %v2439_v15 = vld [vmem:[%s3763_s25 + $0x8] sm:$0xf0] }
 0x1ff   : > { %v2820_v12 = vld [vmem:[%s3763_s25 + $0x64] sm:$0xf0]  ;;  %v2831_v13 = vld [vmem:[#allocation2 + $0xc0] sm:$0xff]  ;;  %v2438_v16 = vor.u32 %v2808_v10, %v2437_v9  ;;  %v2442_v18 = vor.u32 %v2807_v14, %v2439_v15  ;;  %v2810_v20 = vld [vmem:[%s3763_s25 + $0x14] sm:$0xf0] }
 0x200   : > { %v2486_v17 = vor.u32 %v2820_v12, %v2485_v11  ;;  %v2493_v21 = vld [vmem:[%s3763_s25 + $0x70] sm:$0xf]  ;;  %v2822_v22 = vld [vmem:[%s3763_s25 + $0x74] sm:$0xf0]  ;;  %v2809_v23 = vld [vmem:[%s3763_s25 + $0x14] sm:$0xf]  ;;  %v2446_v25 = vor.u32 %v2810_v20, %v2445_v19 }
 0x201   : > { %1241 = vmatpush.bf16.msra.mxu0 %v2828_v62  ;;  %3009 = vmatpush.bf16.msra.mxu3 %v2828_v62  ;;  %v2447_v24 = vld [vmem:[%s3763_s25 + $0x18] sm:$0xf0]  ;;  %v2494_v26 = vor.u32 %v2822_v22, %v2493_v21  ;;  %v2453_v28 = vld [vmem:[%s3763_s25 + $0x20] sm:$0xf]  ;;  %v2812_v29 = vld [vmem:[%s3763_s25 + $0x24] sm:$0xf0] }
 0x202   : > { %1290 = vmatpush.bf16.msra.mxu1 %v2836_v63  ;;  %v2450_v27 = vor.u32 %v2809_v23, %v2447_v24  ;;  %v2819_v30 = vld [vmem:[%s3763_s25 + $0x64] sm:$0xf]  ;;  %v2487_v31 = vld [vmem:[%s3763_s25 + $0x68] sm:$0xf0]  ;;  %v2454_v34 = vor.u32 %v2812_v29, %v2453_v28  ;;  %v2461_v37 = vld [vmem:[%s3763_s25 + $0x30] sm:$0xf] }
 0x203   : > { %v2811_v32 = vld [vmem:[%s3763_s25 + $0x24] sm:$0xf]  ;;  %v2455_v33 = vld [vmem:[%s3763_s25 + $0x28] sm:$0xf0]  ;;  %v2490_v35 = vor.u32 %v2819_v30, %v2487_v31  ;;  %v2814_v38 = vld [vmem:[%s3763_s25 + $0x34] sm:$0xf0] }
 0x204   : > { %v2458_v36 = vor.u32 %v2811_v32, %v2455_v33  ;;  %v2821_v39 = vld [vmem:[%s3763_s25 + $0x74] sm:$0xf]  ;;  %v2495_v40 = vld [vmem:[%s3763_s25 + $0x78] sm:$0xf0]  ;;  %v2462_v43 = vor.u32 %v2814_v38, %v2461_v37  ;;  %v2846_v46 = vld [vmem:[%s3661_s24 + $0x38] sm:$0xff] }
 0x205   : > { %1242 = vmatpush.bf16.msra.mxu0 %v2827_v0  ;;  %3010 = vmatpush.bf16.msra.mxu3 %v2827_v0  ;;  %v2813_v41 = vld [vmem:[%s3763_s25 + $0x34] sm:$0xf]  ;;  %v2463_v42 = vld [vmem:[%s3763_s25 + $0x38] sm:$0xf0]  ;;  %v2498_v44 = vor.u32 %v2821_v39, %v2495_v40  ;;  %v2469_v49 = vld [vmem:[%s3763_s25 + $0x40] sm:$0xf] }
 0x206   : > { %1291 = vmatpush.bf16.msra.mxu1 %v2835_v1  ;;  %v2466_v45 = vor.u32 %v2813_v41, %v2463_v42  ;;  %1413 = vmatpush.bf16.msra.mxu2 %v2846_v46  ;;  %v2845_v47 = vld [vmem:[%s3661_s24 + $0x30] sm:$0xff]  ;;  %v2844_v48 = vld [vmem:[%s3661_s24 + $0x28] sm:$0xff]  ;;  %v2816_v50 = vld [vmem:[%s3763_s25 + $0x44] sm:$0xf0] }
 0x207   : > { %v2815_v51 = vld [vmem:[%s3763_s25 + $0x44] sm:$0xf]  ;;  %v2471_v52 = vld [vmem:[%s3763_s25 + $0x48] sm:$0xf0]  ;;  %v2470_v54 = vor.u32 %v2816_v50, %v2469_v49  ;;  %v2477_v57 = vld [vmem:[%s3763_s25 + $0x50] sm:$0xf] }
 0x208   : > { %v2843_v53 = vld [vmem:[%s3661_s24 + $0x20] sm:$0xff]  ;;  %v2474_v55 = vor.u32 %v2815_v51, %v2471_v52  ;;  %v2842_v56 = vld [vmem:[%s3661_s24 + $0x18] sm:$0xff]  ;;  %v2818_v58 = vld [vmem:[%s3763_s25 + $0x54] sm:$0xf0] }
 0x209   : > { %1243 = vmatpush.bf16.msra.mxu0 %v2826_v2  ;;  %3011 = vmatpush.bf16.msra.mxu3 %v2826_v2  ;;  %v2479_v60 = vld [vmem:[%s3763_s25 + $0x58] sm:$0xf0]  ;;  %v2840_v0 = vld [vmem:[%s3661_s24 + $0x8] sm:$0xff] }
 0x20a   : > { %1292 = vmatpush.bf16.msra.mxu1 %v2834_v3  ;;  %1414 = vmatpush.bf16.msra.mxu2 %v2845_v47 }
 0x20d   : > { %1244 = vmatpush.bf16.msra.mxu0 %v2825_v4  ;;  %3012 = vmatpush.bf16.msra.mxu3 %v2825_v4 }
 0x20e   : > { %1293 = vmatpush.bf16.msra.mxu1 %v2833_v5  ;;  %1415 = vmatpush.bf16.msra.mxu2 %v2844_v48 }
 0x211   : > { %1245 = vmatpush.bf16.msra.mxu0 %v2824_v6  ;;  %3013 = vmatpush.bf16.msra.mxu3 %v2824_v6 }
 0x212   : > { %1294 = vmatpush.bf16.msra.mxu1 %v2832_v7  ;;  %1416 = vmatpush.bf16.msra.mxu2 %v2843_v53 }
 0x215   : > { %1246 = vmatpush.bf16.msra.mxu0 %v2823_v8  ;;  %3014 = vmatpush.bf16.msra.mxu3 %v2823_v8 }
 0x216   : > { %1295 = vmatpush.bf16.msra.mxu1 %v2831_v13  ;;  %1417 = vmatpush.bf16.msra.mxu2 %v2842_v56 }
 0x218   : > { %1247 = vmatmul.bf16.vlgmr.msra.gmra.mxu0 %v2438_v16  ;;  %1277 = vmatmul.bf16.vlgmr.msra.gmra.mxu3 %v2486_v17 }
 0x219   : > { %3015 = vmatpush.bf16.msrb.mxu3 %v2838_v59  ;;  %1296 = vmatmul.bf16.vlgmr.msra.gmra.mxu1 %v2442_v18  ;;  %v2817_v59 = vld [vmem:[%s3763_s25 + $0x54] sm:$0xf] }
 0x21a   : > { %v2482_v62 = vor.u32 %v2817_v59, %v2479_v60  ;;  %v3156_v59 = vld [vmem:[%s3667_s23] ss:$0 sm:$0xff] }
 0x21d   : > { %3016 = vmatpush.bf16.msrb.mxu3 %v2837_v61  ;;  %v2478_v61 = vor.u32 %v2818_v58, %v2477_v57 }
 0x221   : > { %3017 = vmatpush.bf16.msrb.mxu3 %v2836_v63  ;;  %v2841_v63 = vld [vmem:[%s3661_s24 + $0x10] sm:$0xff] }
 0x222   : > { %1418 = vmatpush.bf16.msra.mxu2 %v2841_v63 }
 0x225   : > { %3018 = vmatpush.bf16.msrb.mxu3 %v2835_v1  ;;  %v2839_v1 = vld [vmem:[%s3661_s24] sm:$0xff] }
 0x226   : > { %1419 = vmatpush.bf16.msra.mxu2 %v2840_v0 }
 0x228   : > { %1252 = vmatmul.bf16.gmra.mxu0 %v2446_v25  ;;  %1282 = vmatmul.bf16.gmra.mxu3 %v2494_v26 }
 0x229   : > { %3019 = vmatpush.bf16.msrb.mxu3 %v2834_v3  ;;  %1301 = vmatmul.bf16.gmra.mxu1 %v2450_v27 }
 0x22a   : > { %1420 = vmatpush.bf16.msra.mxu2 %v2839_v1 }
 0x22d   : > { %3020 = vmatpush.bf16.msrb.mxu3 %v2833_v5 }
 0x231   : > { %3021 = vmatpush.bf16.msrb.mxu3 %v2832_v7 }
 0x235   : > { %3022 = vmatpush.bf16.msrb.mxu3 %v2831_v13 }
 0x238   : > { %1257 = vmatmul.bf16.gmra.mxu0 %v2454_v34  ;;  %1326 = vmatmul.bf16.vlgmr.msrb.gmra.mxu3 %v2490_v35 }
 0x239   : > { %1306 = vmatmul.bf16.gmra.mxu1 %v2458_v36  ;;  %3023 = vmatpush.bf16.msra.mxu3 %v2846_v46 }
 0x23d   : > { %3024 = vmatpush.bf16.msra.mxu3 %v2845_v47 }
 0x241   : > { %3025 = vmatpush.bf16.msra.mxu3 %v2844_v48 }
 0x245   : > { %3026 = vmatpush.bf16.msra.mxu3 %v2843_v53 }
 0x248   : > { %1262 = vmatmul.bf16.gmra.mxu0 %v2462_v43  ;;  %1331 = vmatmul.bf16.gmra.mxu3 %v2498_v44 }
 0x249   : > { %1311 = vmatmul.bf16.gmra.mxu1 %v2466_v45  ;;  %3027 = vmatpush.bf16.msra.mxu3 %v2842_v56 }
 0x24d   : > { %3028 = vmatpush.bf16.msra.mxu3 %v2841_v63 }
 0x251   : > { %3029 = vmatpush.bf16.msra.mxu3 %v2840_v0 }
 0x255   : > { %3030 = vmatpush.bf16.msra.mxu3 %v2839_v1 }
 0x258   : > { %1267 = vmatmul.bf16.gmra.mxu0 %v2470_v54 }
 0x259   : > { %1316 = vmatmul.bf16.gmra.mxu1 %v2474_v55 }
 0x268   : > { %1272 = vmatmul.bf16.gmra.mxu0 %v2478_v61 }
 0x269   : > { %1321 = vmatmul.bf16.gmra.mxu1 %v2482_v62 }
 0x295   : > { %v1248_v2 = vpop.f32.mrf.mxu0 }
 0x296   : > { %v1297_v3 = vpop.f32.mrf.mxu1 }
 0x297   : > { %v1298_v7 = vadd.f32 %v1297_v3, %v1248_v2 }
 0x29b   : > { %v1278_v4 = vpop.f32.mrf.mxu3 }
 0x29d   : > { %v1250_v5 = vpop.f32.mrf.mxu0 }
 0x29e   : > { %v1299_v6 = vpop.f32.mrf.mxu1 }
 0x29f   : > { %v1300_v8 = vadd.f32 %v1299_v6, %v1250_v5 }
 0x2a1   : > { %v1337_v9 = vpack.c.bf16 %v1300_v8, %v1298_v7 }
 0x2a3   : > { %1421 = vmatmul.bf16.vlgmr.msra.gmra.mxu2 %v1337_v9  ;;  %v1280_v10 = vpop.f32.mrf.mxu3 }
 0x2a5   : > { %v1253_v11 = vpop.f32.mrf.mxu0 }
 0x2a6   : > { %v1302_v12 = vpop.f32.mrf.mxu1 }
 0x2a7   : > { %v1303_v16 = vadd.f32 %v1302_v12, %v1253_v11 }
 0x2ab   : > { %v1283_v13 = vpop.f32.mrf.mxu3 }
 0x2ad   : > { %v1255_v14 = vpop.f32.mrf.mxu0 }
 0x2ae   : > { %v1304_v15 = vpop.f32.mrf.mxu1 }
 0x2af   : > { %v1305_v17 = vadd.f32 %v1304_v15, %v1255_v14 }
 0x2b1   : > { %v1338_v18 = vpack.c.bf16 %v1305_v17, %v1303_v16 }
 0x2b3   : > { %1426 = vmatmul.bf16.gmra.mxu2 %v1338_v18  ;;  %v1285_v19 = vpop.f32.mrf.mxu3 }
 0x2b5   : > { %v1258_v20 = vpop.f32.mrf.mxu0 }
 0x2b6   : > { %v1307_v21 = vpop.f32.mrf.mxu1 }
 0x2b7   : > { %v1308_v25 = vadd.f32 %v1307_v21, %v1258_v20 }
 0x2bb   : > { %v1327_v22 = vpop.f32.mrf.mxu3 }
 0x2bc   : > { %v1328_v29 = vadd.f32 %v1327_v22, %v1278_v4 }
 0x2bd   : > { %v1260_v23 = vpop.f32.mrf.mxu0 }
 0x2be   : > { %v1309_v24 = vpop.f32.mrf.mxu1 }
 0x2bf   : > { %v1310_v26 = vadd.f32 %v1309_v24, %v1260_v23 }
 0x2c1   : > { %v1339_v27 = vpack.c.bf16 %v1310_v26, %v1308_v25 }
 0x2c3   : > { %1431 = vmatmul.bf16.gmra.mxu2 %v1339_v27  ;;  %v1329_v28 = vpop.f32.mrf.mxu3 }
 0x2c4   : > { %v1330_v30 = vadd.f32 %v1329_v28, %v1280_v10 }
 0x2c5   : > { %v1263_v31 = vpop.f32.mrf.mxu0 }
 0x2c6   : > { %v1343_v32 = vpack.c.bf16 %v1330_v30, %v1328_v29  ;;  %v1312_v33 = vpop.f32.mrf.mxu1 }
 0x2c7   : > { %v1313_v37 = vadd.f32 %v1312_v33, %v1263_v31 }
 0x2c8   : > { %1451 = vmatmul.bf16.vlgmr.msra.gmra.mxu3 %v1343_v32 }
 0x2cb   : > { %v1332_v34 = vpop.f32.mrf.mxu3 }
 0x2cc   : > { %v1333_v41 = vadd.f32 %v1332_v34, %v1283_v13 }
 0x2cd   : > { %v1265_v35 = vpop.f32.mrf.mxu0 }
 0x2ce   : > { %v1314_v36 = vpop.f32.mrf.mxu1 }
 0x2cf   : > { %v1315_v38 = vadd.f32 %v1314_v36, %v1265_v35 }
 0x2d1   : > { %v1340_v39 = vpack.c.bf16 %v1315_v38, %v1313_v37 }
 0x2d3   : > { %1436 = vmatmul.bf16.gmra.mxu2 %v1340_v39  ;;  %v1334_v40 = vpop.f32.mrf.mxu3 }
 0x2d4   : > { %v1335_v42 = vadd.f32 %v1334_v40, %v1285_v19 }
 0x2d5   : > { %v1268_v43 = vpop.f32.mrf.mxu0 }
 0x2d6   : > { %v1317_v44 = vpop.f32.mrf.mxu1  ;;  %v1344_v45 = vpack.c.bf16 %v1335_v42, %v1333_v41 }
 0x2d7   : > { %v1318_v48 = vadd.f32 %v1317_v44, %v1268_v43 }
 0x2d8   : > { %1456 = vmatmul.bf16.gmra.mxu3 %v1344_v45 }
 0x2dd   : > { %v1270_v46 = vpop.f32.mrf.mxu0 }
 0x2de   : > { %v1319_v47 = vpop.f32.mrf.mxu1 }
 0x2df   : > { %v1320_v49 = vadd.f32 %v1319_v47, %v1270_v46 }
 0x2e1   : > { %v1341_v50 = vpack.c.bf16 %v1320_v49, %v1318_v48 }
 0x2e3   : > { %1441 = vmatmul.bf16.gmra.mxu2 %v1341_v50 }
 0x2e5   : > { %v1273_v51 = vpop.f32.mrf.mxu0 }
 0x2e6   : > { %v1322_v52 = vpop.f32.mrf.mxu1 }
 0x2e7   : > { %v1323_v55 = vadd.f32 %v1322_v52, %v1273_v51 }
 0x2ed   : > { %v1275_v53 = vpop.f32.mrf.mxu0 }
 0x2ee   : > { %v1324_v54 = vpop.f32.mrf.mxu1 }
 0x2ef   : > { %v1325_v56 = vadd.f32 %v1324_v54, %v1275_v53 }
 0x2f1   : > { %v1342_v57 = vpack.c.bf16 %v1325_v56, %v1323_v55 }
 0x2f3   : > { %1446 = vmatmul.bf16.gmra.mxu2 %v1342_v57 }
 0x326   : > { %v1422_v58 = vpop.f32.mrf.mxu2 }
 0x327   : > { %v1423_v60 = vadd.f32 %v3156_v59, %v1422_v58 }
 0x329   : > { %v1462_v63 = vmax.f32 %v1423_v60, 0.0 }
 0x32e   : > { %v1424_v61 = vpop.f32.mrf.mxu2 }
 0x32f   : > { %v1425_v62 = vadd.f32 %v3156_v59, %v1424_v61 }
 0x331   : > { %v1463_v0 = vmax.f32 %v1425_v62, 0.0 }
 0x333   : > { %v2931_v1 = vpack.c.bf16 %v1463_v0, %v1462_v63 }
 0x335   : > { %2932 = vst [vmem:[%s3807_s26] sm:$0xff] %v2931_v1  }
 0x336   : > { %v1427_v2 = vpop.f32.mrf.mxu2 }
 0x337   : > { %v1428_v3 = vadd.f32 %v3156_v59, %v1427_v2 }
 0x339   : > { %v1464_v6 = vmax.f32 %v1428_v3, 0.0 }
 0x33e   : > { %v1429_v4 = vpop.f32.mrf.mxu2 }
 0x33f   : > { %v1430_v5 = vadd.f32 %v3156_v59, %v1429_v4 }
 0x341   : > { %v1465_v7 = vmax.f32 %v1430_v5, 0.0 }
 0x343   : > { %v2936_v8 = vpack.c.bf16 %v1465_v7, %v1464_v6 }
 0x345   : > { %2976 = vst [vmem:[%s3807_s26 + $0x8] sm:$0xff] %v2936_v8  }
 0x346   : > { %v1432_v9 = vpop.f32.mrf.mxu2 }
 0x347   : > { %v1433_v11 = vadd.f32 %v3156_v59, %v1432_v9 }
 0x349   : > { %v1466_v14 = vmax.f32 %v1433_v11, 0.0 }
 0x34b   : > { %v1452_v10 = vpop.f32.mrf.mxu3 }
 0x34c   : > { %v1453_v16 = vadd.f32 %v3156_v59, %v1452_v10 }
 0x34e   : > { %v1434_v12 = vpop.f32.mrf.mxu2  ;;  %v1474_v20 = vmax.f32 %v1453_v16, 0.0 }
 0x34f   : > { %v1435_v13 = vadd.f32 %v3156_v59, %v1434_v12 }
 0x351   : > { %v1467_v15 = vmax.f32 %v1435_v13, 0.0 }
 0x353   : > { %v2941_v17 = vpack.c.bf16 %v1467_v15, %v1466_v14  ;;  %v1454_v18 = vpop.f32.mrf.mxu3 }
 0x354   : > { %v1455_v19 = vadd.f32 %v3156_v59, %v1454_v18 }
 0x355   : > { %2977 = vst [vmem:[%s3807_s26 + $0x10] sm:$0xff] %v2941_v17  }
 0x356   : > { %v1475_v21 = vmax.f32 %v1455_v19, 0.0  ;;  %v1437_v22 = vpop.f32.mrf.mxu2 }
 0x357   : > { %v1438_v25 = vadd.f32 %v3156_v59, %v1437_v22 }
 0x358   : > { %v2961_v23 = vpack.c.bf16 %v1475_v21, %v1474_v20 }
 0x359   : > { %v1468_v28 = vmax.f32 %v1438_v25, 0.0 }
 0x35a   : > { %2981 = vst [vmem:[%s3807_s26 + $0x30] sm:$0xff] %v2961_v23  }
 0x35b   : > { %v1457_v24 = vpop.f32.mrf.mxu3 }
 0x35c   : > { %v1458_v30 = vadd.f32 %v3156_v59, %v1457_v24 }
 0x35e   : > { %v1439_v26 = vpop.f32.mrf.mxu2  ;;  %v1476_v34 = vmax.f32 %v1458_v30, 0.0 }
 0x35f   : > { %v1440_v27 = vadd.f32 %v3156_v59, %v1439_v26 }
 0x361   : > { %v1469_v29 = vmax.f32 %v1440_v27, 0.0 }
 0x363   : > { %v2946_v31 = vpack.c.bf16 %v1469_v29, %v1468_v28  ;;  %v1459_v32 = vpop.f32.mrf.mxu3 }
 0x364   : > { %v1460_v33 = vadd.f32 %v3156_v59, %v1459_v32 }
 0x365   : > { %2978 = vst [vmem:[%s3807_s26 + $0x18] sm:$0xff] %v2946_v31  }
 0x366   : > { %v1477_v35 = vmax.f32 %v1460_v33, 0.0  ;;  %v1442_v36 = vpop.f32.mrf.mxu2 }
 0x367   : > { %v1443_v38 = vadd.f32 %v3156_v59, %v1442_v36 }
 0x368   : > { %v2966_v37 = vpack.c.bf16 %v1477_v35, %v1476_v34 }
 0x369   : > { %v1470_v41 = vmax.f32 %v1443_v38, 0.0 }
 0x36a   : > { %2982 = vst [vmem:[%s3807_s26 + $0x38] sm:$0xff] %v2966_v37  }
 0x36e   : > { %v1444_v39 = vpop.f32.mrf.mxu2 }
 0x36f   : > { %v1445_v40 = vadd.f32 %v3156_v59, %v1444_v39 }
 0x371   : > { %v1471_v42 = vmax.f32 %v1445_v40, 0.0 }
 0x373   : > { %v2951_v43 = vpack.c.bf16 %v1471_v42, %v1470_v41 }
 0x375   : > { %2979 = vst [vmem:[%s3807_s26 + $0x20] sm:$0xff] %v2951_v43  }
 0x376   : > { %v1447_v44 = vpop.f32.mrf.mxu2 }
 0x377   : > { %v1448_v45 = vadd.f32 %v3156_v59, %v1447_v44 }
 0x379   : > { %v1472_v48 = vmax.f32 %v1448_v45, 0.0 }
 0x37e   : > { %v1449_v46 = vpop.f32.mrf.mxu2 }
 0x37f   : > { %v1450_v47 = vadd.f32 %v3156_v59, %v1449_v46 }
 0x381   : > { %v1473_v49 = vmax.f32 %v1450_v47, 0.0 }
 0x383   : > { %v2956_v50 = vpack.c.bf16 %v1473_v49, %v1472_v48 }
 0x385   : > { %2980 = vst [vmem:[%s3807_s26 + $0x28] sm:$0xff] %v2956_v50  }
 0x386 PF: > { %p2596_p3 = scmp.ne.s32.totalorder %s3439_s17, 1 }
 0x387   : > { %s3819_s10 = scalar_lea.vmem (!%p2596_p3), [#allocation5], %s3693_s12 }
 0x388   : > { %1514 = sbr.rel (%p2596_p3) target bundleno = 1507 (0x5e3), region = 100 }
 0x38d   : > { %v2871_v51 = vld [vmem:[#allocation2 + $0xb8] sm:$0xff]  ;;  %v2870_v53 = vld [vmem:[#allocation2 + $0xb0] sm:$0xff]  ;;  %v2869_v55 = vld [vmem:[#allocation2 + $0xa8] sm:$0xff] }
 0x38e   : > { %v2879_v52 = vld [vmem:[#allocation2 + $0xf8] sm:$0xff]  ;;  %1745 = vmatpush.bf16.msra.mxu0 %v2871_v51  ;;  %v2878_v54 = vld [vmem:[#allocation2 + $0xf0] sm:$0xff]  ;;  %v2877_v56 = vld [vmem:[#allocation2 + $0xe8] sm:$0xff] }
 0x38f   : > { %1794 = vmatpush.bf16.msra.mxu1 %v2879_v52  ;;  %v2868_v57 = vld [vmem:[#allocation2 + $0xa0] sm:$0xff]  ;;  %v2867_v59 = vld [vmem:[#allocation2 + $0x98] sm:$0xff]  ;;  %v2866_v61 = vld [vmem:[#allocation2 + $0x90] sm:$0xff] }
 0x390   : > { %v2876_v58 = vld [vmem:[#allocation2 + $0xe0] sm:$0xff]  ;;  %v2875_v60 = vld [vmem:[#allocation2 + $0xd8] sm:$0xff]  ;;  %v2874_v62 = vld [vmem:[#allocation2 + $0xd0] sm:$0xff] }
 0x391   : > { %v2865_v63 = vld [vmem:[#allocation2 + $0x88] sm:$0xff]  ;;  %v2864_v1 = vld [vmem:[#allocation2 + $0x80] sm:$0xff]  ;;  %v2609_v9 = vld [vmem:[%s3819_s10 + $0x10] sm:$0xf] }
 0x392   : > { %1746 = vmatpush.bf16.msra.mxu0 %v2870_v53  ;;  %v2873_v0 = vld [vmem:[#allocation2 + $0xc8] sm:$0xff]  ;;  %v2872_v2 = vld [vmem:[#allocation2 + $0xc0] sm:$0xff]  ;;  %v2851_v10 = vld [vmem:[%s3819_s10 + $0x14] sm:$0xf0] }
 0x393   : > { %1795 = vmatpush.bf16.msra.mxu1 %v2878_v54  ;;  %v2601_v3 = vld [vmem:[%s3819_s10] sm:$0xf]  ;;  %v2849_v4 = vld [vmem:[%s3819_s10 + $0x4] sm:$0xf0]  ;;  %v2848_v5 = vld [vmem:[%s3819_s10 + $0x4] sm:$0xf]  ;;  %v2610_v13 = vor.u32 %v2851_v10, %v2609_v9 }
 0x394   : > { %v2603_v6 = vld [vmem:[%s3819_s10 + $0x8] sm:$0xf0]  ;;  %v2602_v7 = vor.u32 %v2849_v4, %v2601_v3  ;;  %v2850_v11 = vld [vmem:[%s3819_s10 + $0x14] sm:$0xf]  ;;  %v2611_v12 = vld [vmem:[%s3819_s10 + $0x18] sm:$0xf0] }
 0x395   : > { %v2606_v8 = vor.u32 %v2848_v5, %v2603_v6  ;;  %v2614_v14 = vor.u32 %v2850_v11, %v2611_v12  ;;  %v2617_v15 = vld [vmem:[%s3819_s10 + $0x20] sm:$0xf]  ;;  %v2853_v16 = vld [vmem:[%s3819_s10 + $0x24] sm:$0xf0]  ;;  %v2852_v17 = vld [vmem:[%s3819_s10 + $0x24] sm:$0xf] }
 0x396   : > { %1747 = vmatpush.bf16.msra.mxu0 %v2869_v55  ;;  %v2619_v18 = vld [vmem:[%s3819_s10 + $0x28] sm:$0xf0]  ;;  %v2618_v19 = vor.u32 %v2853_v16, %v2617_v15  ;;  %v2625_v21 = vld [vmem:[%s3819_s10 + $0x30] sm:$0xf]  ;;  %v2855_v22 = vld [vmem:[%s3819_s10 + $0x34] sm:$0xf0] }
 0x397   : > { %1796 = vmatpush.bf16.msra.mxu1 %v2877_v56  ;;  %v2622_v20 = vor.u32 %v2852_v17, %v2619_v18  ;;  %v2854_v23 = vld [vmem:[%s3819_s10 + $0x34] sm:$0xf]  ;;  %v2627_v24 = vld [vmem:[%s3819_s10 + $0x38] sm:$0xf0]  ;;  %v2626_v25 = vor.u32 %v2855_v22, %v2625_v21  ;;  %v2633_v27 = vld [vmem:[%s3819_s10 + $0x40] sm:$0xf] }
 0x398   : > { %v2630_v26 = vor.u32 %v2854_v23, %v2627_v24  ;;  %v2857_v28 = vld [vmem:[%s3819_s10 + $0x44] sm:$0xf0]  ;;  %v2856_v29 = vld [vmem:[%s3819_s10 + $0x44] sm:$0xf]  ;;  %v2635_v30 = vld [vmem:[%s3819_s10 + $0x48] sm:$0xf0] }
 0x399   : > { %v2634_v31 = vor.u32 %v2857_v28, %v2633_v27  ;;  %v2638_v32 = vor.u32 %v2856_v29, %v2635_v30  ;;  %v2887_v33 = vld [vmem:[%s3661_s24 + $0x38] sm:$0xff]  ;;  %v2886_v34 = vld [vmem:[%s3661_s24 + $0x30] sm:$0xff]  ;;  %v2641_v35 = vld [vmem:[%s3819_s10 + $0x50] sm:$0xf] }
 0x39a   : > { %1748 = vmatpush.bf16.msra.mxu0 %v2868_v57  ;;  %1919 = vmatpush.bf16.msra.mxu2 %v2887_v33  ;;  %v2859_v36 = vld [vmem:[%s3819_s10 + $0x54] sm:$0xf0]  ;;  %v2858_v37 = vld [vmem:[%s3819_s10 + $0x54] sm:$0xf]  ;;  %v2643_v38 = vld [vmem:[%s3819_s10 + $0x58] sm:$0xf0] }
 0x39b   : > { %1797 = vmatpush.bf16.msra.mxu1 %v2876_v58  ;;  %v2642_v39 = vor.u32 %v2859_v36, %v2641_v35  ;;  %v2646_v40 = vor.u32 %v2858_v37, %v2643_v38  ;;  %v2885_v41 = vld [vmem:[%s3661_s24 + $0x28] sm:$0xff]  ;;  %v2884_v42 = vld [vmem:[%s3661_s24 + $0x20] sm:$0xff]  ;;  %v2883_v43 = vld [vmem:[%s3661_s24 + $0x18] sm:$0xff] }
 0x39c   : > { %v2649_v44 = vld [vmem:[%s3819_s10 + $0x60] sm:$0xf]  ;;  %v2861_v45 = vld [vmem:[%s3819_s10 + $0x64] sm:$0xf0]  ;;  %v2860_v46 = vld [vmem:[%s3819_s10 + $0x64] sm:$0xf] }
 0x39d   : > { %v2651_v47 = vld [vmem:[%s3819_s10 + $0x68] sm:$0xf0]  ;;  %v2650_v48 = vor.u32 %v2861_v45, %v2649_v44  ;;  %v2882_v50 = vld [vmem:[%s3661_s24 + $0x10] sm:$0xff]  ;;  %v2881_v51 = vld [vmem:[%s3661_s24 + $0x8] sm:$0xff] }
 0x39e   : > { %1749 = vmatpush.bf16.msra.mxu0 %v2867_v59  ;;  %1920 = vmatpush.bf16.msra.mxu2 %v2886_v34  ;;  %v2654_v49 = vor.u32 %v2860_v46, %v2651_v47  ;;  %v2880_v52 = vld [vmem:[%s3661_s24] sm:$0xff]  ;;  %v2657_v53 = vld [vmem:[%s3819_s10 + $0x70] sm:$0xf]  ;;  %v2863_v54 = vld [vmem:[%s3819_s10 + $0x74] sm:$0xf0] }
 0x39f   : > { %1798 = vmatpush.bf16.msra.mxu1 %v2875_v60  ;;  %v2862_v55 = vld [vmem:[%s3819_s10 + $0x74] sm:$0xf]  ;;  %v2659_v56 = vld [vmem:[%s3819_s10 + $0x78] sm:$0xf0]  ;;  %v2658_v57 = vor.u32 %v2863_v54, %v2657_v53 }
 0x3a0   : > { %v2662_v58 = vor.u32 %v2862_v55, %v2659_v56 }
 0x3a2   : > { %1750 = vmatpush.bf16.msra.mxu0 %v2866_v61  ;;  %1921 = vmatpush.bf16.msra.mxu2 %v2885_v41 }
 0x3a3   : > { %1799 = vmatpush.bf16.msra.mxu1 %v2874_v62 }
 0x3a6   : > { %1751 = vmatpush.bf16.msra.mxu0 %v2865_v63  ;;  %1922 = vmatpush.bf16.msra.mxu2 %v2884_v42 }
 0x3a7   : > { %1800 = vmatpush.bf16.msra.mxu1 %v2873_v0 }
 0x3aa   : > { %1752 = vmatpush.bf16.msra.mxu0 %v2864_v1  ;;  %1923 = vmatpush.bf16.msra.mxu2 %v2883_v43 }
 0x3ab   : > { %1801 = vmatpush.bf16.msra.mxu1 %v2872_v2 }
 0x3ad   : > { %1753 = vmatmul.bf16.vlgmr.msra.gmra.mxu0 %v2602_v7 }
 0x3ae   : > { %1802 = vmatmul.bf16.vlgmr.msra.gmra.mxu1 %v2606_v8  ;;  %1924 = vmatpush.bf16.msra.mxu2 %v2882_v50 }
 0x3b2   : > { %1925 = vmatpush.bf16.msra.mxu2 %v2881_v51 }
 0x3b6   : > { %1926 = vmatpush.bf16.msra.mxu2 %v2880_v52  ;;  %v3157_v52 = vld [vmem:[%s3667_s23] ss:$0 sm:$0xff] }
 0x3bd   : > { %1758 = vmatmul.bf16.gmra.mxu0 %v2610_v13 }
 0x3be   : > { %1807 = vmatmul.bf16.gmra.mxu1 %v2614_v14 }
 0x3cd   : > { %1763 = vmatmul.bf16.gmra.mxu0 %v2618_v19 }
 0x3ce   : > { %1812 = vmatmul.bf16.gmra.mxu1 %v2622_v20 }
 0x3dd   : > { %1768 = vmatmul.bf16.gmra.mxu0 %v2626_v25 }
 0x3de   : > { %1817 = vmatmul.bf16.gmra.mxu1 %v2630_v26 }
 0x3ed   : > { %1773 = vmatmul.bf16.gmra.mxu0 %v2634_v31 }
 0x3ee   : > { %1822 = vmatmul.bf16.gmra.mxu1 %v2638_v32 }
 0x3fd   : > { %1778 = vmatmul.bf16.gmra.mxu0 %v2642_v39 }
 0x3fe   : > { %1827 = vmatmul.bf16.gmra.mxu1 %v2646_v40 }
 0x40d   : > { %1783 = vmatmul.bf16.gmra.mxu0 %v2650_v48 }
 0x40e   : > { %1832 = vmatmul.bf16.gmra.mxu1 %v2654_v49 }
 0x41d   : > { %1788 = vmatmul.bf16.gmra.mxu0 %v2658_v57 }
 0x41e   : > { %1837 = vmatmul.bf16.gmra.mxu1 %v2662_v58 }
 0x42a   : > { %v1754_v59 = vpop.f32.mrf.mxu0 }
 0x42b   : > { %v1803_v60 = vpop.f32.mrf.mxu1 }
 0x42c   : > { %v1804_v63 = vadd.f32 %v1803_v60, %v1754_v59 }
 0x432   : > { %v1756_v61 = vpop.f32.mrf.mxu0 }
 0x433   : > { %v1805_v62 = vpop.f32.mrf.mxu1 }
 0x434   : > { %v1806_v0 = vadd.f32 %v1805_v62, %v1756_v61 }
 0x436   : > { %v1843_v1 = vpack.c.bf16 %v1806_v0, %v1804_v63 }
 0x438   : > { %1927 = vmatmul.bf16.vlgmr.msra.gmra.mxu2 %v1843_v1 }
 0x43a   : > { %v1759_v2 = vpop.f32.mrf.mxu0 }
 0x43b   : > { %v1808_v3 = vpop.f32.mrf.mxu1 }
 0x43c   : > { %v1809_v6 = vadd.f32 %v1808_v3, %v1759_v2 }
 0x442   : > { %v1761_v4 = vpop.f32.mrf.mxu0 }
 0x443   : > { %v1810_v5 = vpop.f32.mrf.mxu1 }
 0x444   : > { %v1811_v7 = vadd.f32 %v1810_v5, %v1761_v4 }
 0x446   : > { %v1844_v8 = vpack.c.bf16 %v1811_v7, %v1809_v6 }
 0x448   : > { %1932 = vmatmul.bf16.gmra.mxu2 %v1844_v8 }
 0x44a   : > { %v1764_v9 = vpop.f32.mrf.mxu0 }
 0x44b   : > { %v1813_v10 = vpop.f32.mrf.mxu1 }
 0x44c   : > { %v1814_v13 = vadd.f32 %v1813_v10, %v1764_v9 }
 0x452   : > { %v1766_v11 = vpop.f32.mrf.mxu0 }
 0x453   : > { %v1815_v12 = vpop.f32.mrf.mxu1 }
 0x454   : > { %v1816_v14 = vadd.f32 %v1815_v12, %v1766_v11 }
 0x456   : > { %v1845_v15 = vpack.c.bf16 %v1816_v14, %v1814_v13 }
 0x458   : > { %1937 = vmatmul.bf16.gmra.mxu2 %v1845_v15 }
 0x45a   : > { %v1769_v16 = vpop.f32.mrf.mxu0 }
 0x45b   : > { %v1818_v17 = vpop.f32.mrf.mxu1 }
 0x45c   : > { %v1819_v20 = vadd.f32 %v1818_v17, %v1769_v16 }
 0x462   : > { %v1771_v18 = vpop.f32.mrf.mxu0 }
 0x463   : > { %v1820_v19 = vpop.f32.mrf.mxu1 }
 0x464   : > { %v1821_v21 = vadd.f32 %v1820_v19, %v1771_v18 }
 0x466   : > { %v1846_v22 = vpack.c.bf16 %v1821_v21, %v1819_v20 }
 0x468   : > { %1942 = vmatmul.bf16.gmra.mxu2 %v1846_v22 }
 0x46a   : > { %v1774_v23 = vpop.f32.mrf.mxu0 }
 0x46b   : > { %v1823_v24 = vpop.f32.mrf.mxu1 }
 0x46c   : > { %v1824_v27 = vadd.f32 %v1823_v24, %v1774_v23 }
 0x472   : > { %v1776_v25 = vpop.f32.mrf.mxu0 }
 0x473   : > { %v1825_v26 = vpop.f32.mrf.mxu1 }
 0x474   : > { %v1826_v28 = vadd.f32 %v1825_v26, %v1776_v25 }
 0x476   : > { %v1847_v29 = vpack.c.bf16 %v1826_v28, %v1824_v27  ;;  %v1969_v28 = vld [vmem:[%s3685_s6] sm:$0xf] }
 0x478   : > { %1947 = vmatmul.bf16.gmra.mxu2 %v1847_v29  ;;  %v1968_v29 = vld [vmem:[#allocation3] sm:$0xff] }
 0x47a   : > { %v1779_v30 = vpop.f32.mrf.mxu0 }
 0x47b   : > { %v1828_v31 = vpop.f32.mrf.mxu1 }
 0x47c   : > { %v1829_v34 = vadd.f32 %v1828_v31, %v1779_v30 }
 0x482   : > { %v1781_v32 = vpop.f32.mrf.mxu0 }
 0x483   : > { %v1830_v33 = vpop.f32.mrf.mxu1 }
 0x484   : > { %v1831_v35 = vadd.f32 %v1830_v33, %v1781_v32 }
 0x486   : > { %v1848_v36 = vpack.c.bf16 %v1831_v35, %v1829_v34 }
 0x488   : > { %1952 = vmatmul.bf16.gmra.mxu2 %v1848_v36 }
 0x48a   : > { %v1784_v37 = vpop.f32.mrf.mxu0 }
 0x48b   : > { %v1833_v38 = vpop.f32.mrf.mxu1 }
 0x48c   : > { %v1834_v41 = vadd.f32 %v1833_v38, %v1784_v37 }
 0x492   : > { %v1786_v39 = vpop.f32.mrf.mxu0 }
 0x493   : > { %v1835_v40 = vpop.f32.mrf.mxu1 }
 0x494   : > { %v1836_v42 = vadd.f32 %v1835_v40, %v1786_v39 }
 0x496   : > { %v1849_v43 = vpack.c.bf16 %v1836_v42, %v1834_v41 }
 0x498   : > { %1957 = vmatmul.bf16.gmra.mxu2 %v1849_v43 }
 0x49a   : > { %v1789_v44 = vpop.f32.mrf.mxu0 }
 0x49b   : > { %v1838_v45 = vpop.f32.mrf.mxu1 }
 0x49c   : > { %v1839_v48 = vadd.f32 %v1838_v45, %v1789_v44 }
 0x4a2   : > { %v1791_v46 = vpop.f32.mrf.mxu0 }
 0x4a3   : > { %v1840_v47 = vpop.f32.mrf.mxu1 }
 0x4a4   : > { %v1841_v49 = vadd.f32 %v1840_v47, %v1791_v46 }
 0x4a6   : > { %v1850_v50 = vpack.c.bf16 %v1841_v49, %v1839_v48 }
 0x4a8   : > { %1962 = vmatmul.bf16.gmra.mxu2 %v1850_v50 }
 0x4bb   : > { %v1928_v51 = vpop.f32.mrf.mxu2 }
 0x4bc   : > { %v1929_v54 = vadd.f32 %v3157_v52, %v1928_v51 }
 0x4c3   : > { %v1930_v53 = vpop.f32.mrf.mxu2 }
 0x4c4   : > { %v1931_v55 = vadd.f32 %v3157_v52, %v1930_v53 }
 0x4c6   : > { %v1970_v56 = vpack.c.bf16 %v1931_v55, %v1929_v54 }
 0x4cb   : > { %v1933_v57 = vpop.f32.mrf.mxu2 }
 0x4cc   : > { %v1934_v59 = vadd.f32 %v3157_v52, %v1933_v57 }
 0x4d3   : > { %v1935_v58 = vpop.f32.mrf.mxu2 }
 0x4d4   : > { %v1936_v60 = vadd.f32 %v3157_v52, %v1935_v58 }
 0x4d6   : > { %v1971_v61 = vpack.c.bf16 %v1936_v60, %v1934_v59 }
 0x4db   : > { %v1938_v62 = vpop.f32.mrf.mxu2 }
 0x4dc   : > { %v1939_v0 = vadd.f32 %v3157_v52, %v1938_v62 }
 0x4e3   : > { %v1940_v63 = vpop.f32.mrf.mxu2 }
 0x4e4   : > { %v1941_v1 = vadd.f32 %v3157_v52, %v1940_v63 }
 0x4e6   : > { %v1972_v2 = vpack.c.bf16 %v1941_v1, %v1939_v0 }
 0x4eb   : > { %v1943_v3 = vpop.f32.mrf.mxu2 }
 0x4ec   : > { %v1944_v5 = vadd.f32 %v3157_v52, %v1943_v3 }
 0x4f3   : > { %v1945_v4 = vpop.f32.mrf.mxu2 }
 0x4f4   : > { %v1946_v6 = vadd.f32 %v3157_v52, %v1945_v4 }
 0x4f6   : > { %v1973_v7 = vpack.c.bf16 %v1946_v6, %v1944_v5 }
 0x4fb   : > { %v1948_v8 = vpop.f32.mrf.mxu2 }
 0x4fc   : > { %v1949_v26 = vadd.f32 %v3157_v52, %v1948_v8 }
 0x503   : > { %v1950_v9 = vpop.f32.mrf.mxu2 }
 0x504   : > { %v1951_v24 = vadd.f32 %v3157_v52, %v1950_v9 }
 0x506   : > { %v1974_v27 = vpack.c.bf16 %v1951_v24, %v1949_v26 }
 0x50b   : > { %v1953_v10 = vpop.f32.mrf.mxu2 }
 0x50c   : > { %v1954_v23 = vadd.f32 %v3157_v52, %v1953_v10 }
 0x513   : > { %v1955_v11 = vpop.f32.mrf.mxu2 }
 0x514   : > { %v1956_v21 = vadd.f32 %v3157_v52, %v1955_v11 }
 0x516   : > { %v1975_v25 = vpack.c.bf16 %v1956_v21, %v1954_v23 }
 0x51b   : > { %v1958_v12 = vpop.f32.mrf.mxu2 }
 0x51c   : > { %v1959_v20 = vadd.f32 %v3157_v52, %v1958_v12 }
 0x523   : > { %v1960_v13 = vpop.f32.mrf.mxu2 }
 0x524   : > { %v1961_v18 = vadd.f32 %v3157_v52, %v1960_v13 }
 0x526   : > { %v1976_v22 = vpack.c.bf16 %v1961_v18, %v1959_v20 }
 0x52b   : > { %v1963_v14 = vpop.f32.mrf.mxu2 }
 0x52c   : > { %v1964_v16 = vadd.f32 %v3157_v52, %v1963_v14 }
 0x533   : > { %v1965_v15 = vpop.f32.mrf.mxu2 }
 0x534   : > { %v1966_v17 = vadd.f32 %v3157_v52, %v1965_v15 }
 0x536   : > { %v1977_v19 = vpack.c.bf16 %v1966_v17, %v1964_v16 }
 0x538   : > { %1978 = vmatpush.bf16.msra.mxu3 %v1977_v19 }
 0x53c   : > { %1979 = vmatpush.bf16.msra.mxu3 %v1976_v22 }
 0x540   : > { %1980 = vmatpush.bf16.msra.mxu3 %v1975_v25 }
 0x544   : > { %1981 = vmatpush.bf16.msra.mxu3 %v1974_v27 }
 0x548   : > { %1982 = vmatpush.bf16.msra.mxu3 %v1973_v7 }
 0x54c   : > { %1983 = vmatpush.bf16.msra.mxu3 %v1972_v2 }
 0x550   : > { %1984 = vmatpush.bf16.msra.mxu3 %v1971_v61 }
 0x554   : > { %1985 = vmatpush.bf16.msra.mxu3 %v1970_v56 }
 0x557   : > { %1986 = vmatmul.bf16.vlgmr.msra.gmra.mxu3 %v1969_v28 }
 0x5da   : > { %v1987_v30 = vpop.f32.mrf.mxu3 }
 0x5db   : > { %v1991_v31 = vadd.f32 %v1987_v30, %v1968_v29 }
 0x5dd   : > { %1992 = vst [vmem:[#allocation3] sm:$0xff] %v1991_v31 }
 0x5e2   : > { %v1989_v32 = vpop.f32.mrf.mxu3 }
 0x5e3 PF: > { %p1993_p5 = scmp.eq.s32.totalorder %s3435_s16, 1 }
 0x5e5   : > { %p1994_p6 = pnand %p1993_p5, %p476_p7 }
 0x5e6   : > { %s3941_s11 = sld [smem:[#allocation29_spill]] (!%p1994_p6) }
 0x5e7   : > { %1997 = sbr.rel (%p1994_p6) target bundleno = 1894 (0x766), region = 104  ;;  %s3942_s6 = sld [smem:[#allocation31_spill]] (!%p1994_p6) }
 0x5e8   : > { %s3943_s28 = sld [smem:[#allocation32_spill]] (!%p1994_p6) }
 0x5ec   : > { %v1999_v33 = vld [vmem:[%s3941_s11] sm:$0xff]  ;;  %v3462_v36 = vmov 0   ;;  %v2019_v37 = vld [vmem:[#allocation11 + $0x68] sm:$0xff]  ;;  %v2018_v38 = vld [vmem:[#allocation11 + $0x60] sm:$0xff] }
 0x5ed   : > { %v2021_v34 = vld [vmem:[#allocation11 + $0x78] sm:$0xff]  ;;  %v2020_v35 = vld [vmem:[#allocation11 + $0x70] sm:$0xff]  ;;  %3158 = vset.pattern.permute.xlu0 %v3462_v36  ;;  %v2015_v41 = vld [vmem:[#allocation11 + $0x48] sm:$0xff] }
 0x5ee   : > { %2026 = vmatpush.msra.mxu0 %v2021_v34  ;;  %2002 = vperm.xlu0 %3158, %v1999_v33   ;;  %v2017_v39 = vld [vmem:[#allocation11 + $0x58] sm:$0xff]  ;;  %v2016_v40 = vld [vmem:[#allocation11 + $0x50] sm:$0xff]  ;;  %v2014_v42 = vld [vmem:[#allocation11 + $0x40] sm:$0xff] }
 0x5ef   : > { %v2013_v43 = vld [vmem:[#allocation11 + $0x38] sm:$0xff]  ;;  %v2012_v44 = vld [vmem:[#allocation11 + $0x30] sm:$0xff]  ;;  %v2011_v45 = vld [vmem:[#allocation11 + $0x28] sm:$0xff] }
 0x5f0   : > { %2027 = vmatpush.msra.mxu0 %v2020_v35  ;;  %v2010_v46 = vld [vmem:[#allocation11 + $0x20] sm:$0xff]  ;;  %v2009_v47 = vld [vmem:[#allocation11 + $0x18] sm:$0xff]  ;;  %v2008_v48 = vld [vmem:[#allocation11 + $0x10] sm:$0xff] }
 0x5f1   : > { %v2007_v49 = vld [vmem:[#allocation11 + $0x8] sm:$0xff]  ;;  %v2006_v50 = vld [vmem:[#allocation11] sm:$0xff]  ;;  %v2062_v51 = vld [vmem:[#allocation13 + $0x78] sm:$0xff] }
 0x5f2   : > { %2028 = vmatpush.msra.mxu0 %v2019_v37  ;;  %v2061_v52 = vld [vmem:[#allocation13 + $0x70] sm:$0xff]  ;;  %2067 = vmatpush.msra.mxu1 %v2062_v51  ;;  %v2060_v53 = vld [vmem:[#allocation13 + $0x68] sm:$0xff]  ;;  %v2059_v54 = vld [vmem:[#allocation13 + $0x60] sm:$0xff] }
 0x5f3   : > { %v2058_v55 = vld [vmem:[#allocation13 + $0x58] sm:$0xff]  ;;  %v2057_v56 = vld [vmem:[#allocation13 + $0x50] sm:$0xff]  ;;  %v2056_v57 = vld [vmem:[#allocation13 + $0x48] sm:$0xff] }
 0x5f4   : > { %2029 = vmatpush.msra.mxu0 %v2018_v38  ;;  %2068 = vmatpush.msra.mxu1 %v2061_v52  ;;  %v2055_v58 = vld [vmem:[#allocation13 + $0x40] sm:$0xff]  ;;  %v2054_v59 = vld [vmem:[#allocation13 + $0x38] sm:$0xff]  ;;  %v2053_v60 = vld [vmem:[#allocation13 + $0x30] sm:$0xff] }
 0x5f5   : > { %v2052_v61 = vld [vmem:[#allocation13 + $0x28] sm:$0xff]  ;;  %v2051_v62 = vld [vmem:[#allocation13 + $0x20] sm:$0xff]  ;;  %v2050_v63 = vld [vmem:[#allocation13 + $0x18] sm:$0xff] }
 0x5f6   : > { %2030 = vmatpush.msra.mxu0 %v2017_v39  ;;  %2069 = vmatpush.msra.mxu1 %v2060_v53  ;;  %v1998_v0 = vld [vmem:[#allocation3] sm:$0xff]  ;;  %v2048_v4 = vld [vmem:[#allocation13 + $0x8] sm:$0xff]  ;;  %v2047_v5 = vld [vmem:[#allocation13] sm:$0xff] }
 0x5f7   : > { %v2049_v3 = vld [vmem:[#allocation13 + $0x10] sm:$0xff] }
 0x5f8   : > { %2031 = vmatpush.msra.mxu0 %v2016_v40  ;;  %2070 = vmatpush.msra.mxu1 %v2059_v54  ;;  %v3159_v6 = vld [vmem:[%s3942_s6] ss:$0 sm:$0xff] }
 0x5f9   : > { %v3160_v10 = vld [vmem:[%s3943_s28] ss:$0 sm:$0xff] }
 0x5fa   : > { %2032 = vmatpush.msra.mxu0 %v2015_v41  ;;  %2071 = vmatpush.msra.mxu1 %v2058_v55 }
 0x5fc   : > { %2033 = vmatpush.msra.mxu0 %v2014_v42  ;;  %2072 = vmatpush.msra.mxu1 %v2057_v56 }
 0x5fe   : > { %2034 = vmatpush.msra.mxu0 %v2013_v43  ;;  %2073 = vmatpush.msra.mxu1 %v2056_v57 }
 0x600   : > { %2035 = vmatpush.msra.mxu0 %v2012_v44  ;;  %2074 = vmatpush.msra.mxu1 %v2055_v58 }
 0x602   : > { %2036 = vmatpush.msra.mxu0 %v2011_v45  ;;  %2075 = vmatpush.msra.mxu1 %v2054_v59 }
 0x604   : > { %2037 = vmatpush.msra.mxu0 %v2010_v46  ;;  %2076 = vmatpush.msra.mxu1 %v2053_v60 }
 0x606   : > { %2038 = vmatpush.msra.mxu0 %v2009_v47  ;;  %2077 = vmatpush.msra.mxu1 %v2052_v61 }
 0x608   : > { %2039 = vmatpush.msra.mxu0 %v2008_v48  ;;  %2078 = vmatpush.msra.mxu1 %v2051_v62 }
 0x60a   : > { %2040 = vmatpush.msra.mxu0 %v2007_v49  ;;  %2079 = vmatpush.msra.mxu1 %v2050_v63 }
 0x60c   : > { %2041 = vmatpush.msra.mxu0 %v2006_v50  ;;  %2080 = vmatpush.msra.mxu1 %v2049_v3 }
 0x60e   : > { %2081 = vmatpush.msra.mxu1 %v2048_v4 }
 0x610   : > { %2082 = vmatpush.msra.mxu1 %v2047_v5 }
 0x660   : > { %v2003_v1 = vpop.permute.xlu0 %2002 }
 0x661   : > { %v2005_v2 = vmul.f32 %v2003_v1, %v1998_v0 }
 0x663   : > { %2042 = vmatmul.f32.vlgmr.msra.gmra.mxu0 %v2005_v2 }
 0x6e0   : > { %v2043_v7 = vpop.f32.mrf.mxu0 }
 0x6e1   : > { %v2044_v8 = vadd.f32 %v3159_v6, %v2043_v7 }
 0x6e3   : > { %v2046_v9 = vmax.f32 %v2044_v8, 0.0 }
 0x6e5   : > { %2083 = vmatmul.f32.vlgmr.msra.gmra.mxu1 %v2046_v9 }
 0x762   : > { %v2084_v11 = vpop.f32.mrf.mxu1 }
 0x763   : > { %v2085_v12 = vadd.f32 %v3160_v10, %v2084_v11 }
 0x765   : > { %2087 = vst [vmem:[#allocation14] sm:$0xff] %v2085_v12 }
 0x766 PF: > { %p3078_p4 = scmp.eq.s32.totalorder %s3558_s21, 3  ;;  %s3944_s29 = sld [smem:[#allocation33_spill]] }
 0x767   : > { %s3463_s13 = smov [#allocation14]  }
 0x768   : > { %s2094_s30 = sshll.u32 %s3463_s13, 4  ;;  %s2095_s30 = int_to_ptr.vmem [resolvable:$true] %s2094_s30 }
 0x76c   : > { %s2096_s18 = sshll.u32 %s3944_s29, 4  ;;  %s2097_s18 = int_to_ptr.hbm [resolvable:$true] %s2096_s18 }
 0x76d   : > { %3051 = dma.vmem_to_hbm [thread:$0]  (%p3078_p4), %s2095_s30, 128, %s2097_s18, [#allocation7]  }
 0x76e   : > { %3418 = dma.done.wait (%p3078_p4), [#allocation7], 128  }
 0x76f   : > { %3420 = vsyncadd (%p3078_p4), [#allocation7], 4294967168 }
 0x770 PF: > { %s26_s20 = sadd.s32 1, %s3451_s20   ;;  %s3945_s22 = sld [smem:[#allocation27_spill]] }
 0x771   : > { %p23_p1 = scmp.ge.s32.totalorder %s26_s20, 6   ;;  %s3946_s16 = sld [smem:[#allocation24_spill]] }
 0x772   : > { %s3947_s18 = sld [smem:[#allocation25_spill]]  ;;  %s3949_s13 = smov %s3427_s14 }
 0x773   : > { %s3948_s21 = sld [smem:[#allocation26_spill]]  ;;  %s3950_s14 = smov %s3431_s15 }
 0x774   : > { %s3952_s17 = smov %s3447_s19 }
 0x775   :  { %25 = sbr.rel (!%p23_p1) target bundleno = 15 (0xf), region = 155 }
 0x776   : > { %s3951_s15 = smov %s3945_s22 }
 0x779   : > { %s3953_s19 = smov %s3948_s21 }
 0x77a   :  { %2110 = vsyncpa [#allocation6], 1 }
 0x77b   :  { %2112 = vsyncpa [#allocation6 + $0x1], 1 }
 0x77c   :  { %2113 = vsyncpa [#allocation9], 1 }
 0x77d   :  { %2115 = vsyncpa [#allocation9 + $0x1], 1 }
 0x77e   :  { %2116 = vsyncpa [#allocation12], 1 }
 0x77f   :  { %2117 = vsyncpa [#allocation7], 1 }
 0x780   :  { %2119 = vsyncpa [#allocation7 + $0x1], 1 }
 0x781   :  { %2120 = vsyncmov [#allocation4] }
 0x784   :  { %s2121_s25 = vpop.sfrf %2120 }
 0x785   :  { %p2763_p7 = scmp.ne.s32.totalorder %s2121_s25, 0 }
 0x787   :  { %2125 = shalt.err (%p2763_p7)  }

</bundles_post_ra>
